<compile_context>
chip_gen: v7x
topology: tpu7x:2x2x1
jax: 0.10.0
libtpu: 0.0.40
codegen_flags: <defaults>
</compile_context>

<pallas_src>
import functools

import jax
import jax.numpy as jnp
from jax import lax
from jax.experimental import pallas as pl
from jax.experimental.pallas import tpu as pltpu


def _round_up(x, m):
    return (x + m - 1) // m * m


def _sepconv_kernel(*refs, K, S, Wph, TILE_H, has_bias, mx_dtype):
    """Fused depthwise (KxK, stride S) + pointwise (1x1) conv for one row tile.

    Grid = (g, co): g indexes (batch x row-tile) [parallel], co indexes Cout tiles
    [arbitrary].  The depthwise stage runs only under pl.when(co == 0) and its f32
    result persists in `acc_ref` across the co steps of the same g.

    Refs (leading size-1 grid dims squeezed away by the BlockSpecs):
      x_ref  : (S*S, M_in, Cp)   phase-split, flattened (rows*Wph) halo'd input window
      wd_ref : (K*K, Cp)         depthwise weights, one row per tap
      wp_ref : (Cp, TCO)         pointwise weight tile
      b_ref  : (1, TCO)          bias tile (only when has_bias)
      o_ref  : (M_out, TCO)      flattened output tile
      acc_ref: (M_out, Cp) f32   depthwise accumulator scratch (persists across co)
    """
    if has_bias:
        x_ref, wd_ref, wp_ref, b_ref, o_ref, acc_ref = refs
    else:
        x_ref, wd_ref, wp_ref, o_ref, acc_ref = refs
        b_ref = None

    M_in = x_ref.shape[-2]
    Cp = x_ref.shape[-1]
    M_out = TILE_H * Wph
    co = pl.program_id(1)

    @pl.when(co == 0)
    def _depthwise():
        # Hoisted f32 cast of all K*K depthwise taps (single (K*K, Cp) slab).
        wd = wd_ref[...].astype(jnp.float32)
        acc = jnp.zeros((M_out, Cp), dtype=jnp.float32)
        # Load each stride-phase slab once; roll it (XLU, sublane axis) only once per
        # distinct column shift, reused across all kh.  The kh row shift becomes a
        # static 8-aligned prefix slice because Wph is a multiple of 8.
        phase = {}
        rolled = {}
        for kh in range(K):
            for kw in range(K):
                p = (kh % S) * S + (kw % S)     # stride phase (static)
                rh = kh // S                    # row shift inside the phase
                cw = kw // S                    # column shift inside the phase
                if p not in phase:
                    phase[p] = x_ref[p]         # (M_in, Cp), native dtype
                if (p, cw) not in rolled:
                    xs = phase[p]
                    if cw:
                        # rolled[f] = xs[f + cw]; wrap-around lands only in discarded
                        # halo columns (c >= Wo) because Wph >= Wo + halo.
                        xs = pltpu.roll(xs, shift=M_in - cw, axis=0)
                    rolled[(p, cw)] = xs
                xs = rolled[(p, cw)]
                start = rh * Wph                # static, 8-aligned (Wph % 8 == 0)
                window = xs[start:start + M_out, :]
                tap = kh * K + kw
                acc = acc + window.astype(jnp.float32) * wd[tap:tap + 1, :]
        acc_ref[...] = acc

    # ---- pointwise 1x1 conv: lane-dense (M_out, Cp) x (Cp, TCO) MXU matmul ----
    out = jnp.dot(acc_ref[...].astype(mx_dtype), wp_ref[...],
                  preferred_element_type=jnp.float32)
    if has_bias:
        out = out + b_ref[...].astype(jnp.float32)
    o_ref[...] = out.astype(o_ref.dtype)


def separable_conv(x_nchw, w_dw, w_pw, bias, *, kernel_size, stride, padding,
                   tile_h=None, cout_tile=None, matmul_dtype=None):
    """x_nchw: (N, Cin, H, W);  w_dw: (Cin, 1, K, K);  w_pw: (Cout, Cin, 1, 1);
    bias: (Cout,) or None.  Returns (N, Cout, Ho, Wo) (PyTorch semantics)."""
    N, Cin, H, W = x_nchw.shape
    Cout = w_pw.shape[0]
    K, S, P = kernel_size, stride, padding
    dtype = x_nchw.dtype
    itemsize = jnp.dtype(dtype).itemsize
    mx_dtype = jnp.dtype(matmul_dtype) if matmul_dtype is not None else dtype

    Ho = (H + 2 * P - K) // S + 1
    Wo = (W + 2 * P - K) // S + 1
    assert Ho > 0 and Wo > 0

    halo = (K - 1) // S                 # extra rows/cols per tile (phase space)
    Wph = _round_up(Wo + halo, 8)       # sublane-aligned per-row width
    assert Wph >= Wo + halo             # roll wrap must land in discarded columns

    # Lane-dense channel padding (multiple of 128) and Cout tiling.
    Cp = _round_up(max(Cin, 1), 128)
    Cop = _round_up(max(Cout, 1), 128)
    if cout_tile is not None:
        TCO = cout_tile
    elif Cp * Cop * itemsize <= 4 * 1024 * 1024:
        TCO = Cop                       # whole Cout in one tile -> no co redundancy
    else:
        TCO = 256 if Cop % 256 == 0 else 128
    assert Cop % TCO == 0 and TCO % 128 == 0
    n_co = Cop // TCO

    # ---- VMEM budget / compiler limit derived from the hardware generation ----
    try:
        vmem_cap = getattr(pltpu.get_tpu_info(), "vmem_capacity_bytes",
                           128 * 1024 * 1024)
    except Exception:
        vmem_cap = 128 * 1024 * 1024
    if vmem_cap <= 64 * 1024 * 1024:            # v7x-class (64 MiB per TC)
        vmem_budget = 22 * 1024 * 1024
        vmem_limit = 44 * 1024 * 1024
    else:                                       # v5e / v6e (128 MiB)
        vmem_budget = 32 * 1024 * 1024
        vmem_limit = 80 * 1024 * 1024

    def step_vmem(th):
        m_in = (th + halo) * Wph
        m_out = th * Wph
        return (2 * S * S * m_in * Cp * itemsize      # input block, double-buffered
                + 2 * m_out * TCO * itemsize          # output block, double-buffered
                + 2 * Cp * TCO * itemsize             # pointwise weight block
                + 2 * K * K * Cp * itemsize           # depthwise weight block
                + m_out * Cp * 4                      # f32 acc scratch
                # in-kernel temporaries: live phase slabs + rolled copies + f32
                # matmul operand/result
                + (S * S + 2) * m_in * Cp * itemsize
                + m_out * Cp * 4 + m_out * TCO * 4)

    if tile_h is None:
        th_sel = 1
        for th in range(1, Ho + 1):
            if step_vmem(th) <= vmem_budget:
                th_sel = th
        # Megacore balance (v7x): keep >= 2 units of work on the parallel g axis.
        if N == 1 and th_sel >= Ho and Ho >= 2:
            th_sel = -(-Ho // 2)
        TILE_H = max(1, th_sel)
    else:
        TILE_H = max(1, min(tile_h, Ho))
    nr = -(-Ho // TILE_H)
    Ho_pad = nr * TILE_H
    TH_in = TILE_H + halo
    M_in = TH_in * Wph                  # multiple of 8 (Wph is)
    M_out = TILE_H * Wph                # multiple of 8

    # ---- wrapper-side layout plumbing (plain JAX / XLA) ----
    # TODO(synk): for very large activations the halo'd-tile materialization below
    # costs an extra HBM pass; a manual-DMA (pl.ANY) variant would avoid it.
    x = jnp.transpose(x_nchw, (0, 2, 3, 1))                       # NCHW -> NHWC
    x = jnp.pad(x, ((0, 0), (0, 0), (0, 0), (0, Cp - Cin)))       # lane-dense channels

    Hp_ext = (Ho_pad + halo) * S
    Wp_ext = Wph * S
    pad_b = max(0, Hp_ext - H - P)
    pad_r = max(0, Wp_ext - W - P)
    x = jnp.pad(x, ((0, 0), (P, pad_b), (P, pad_r), (0, 0)))
    x = x[:, :Hp_ext, :Wp_ext, :]                                 # crop if over-padded

    # Space-to-depth by the stride so every in-kernel tap is unit-stride.
    x = x.reshape(N, Ho_pad + halo, S, Wph, S, Cp)
    # Halo'd row tiles (duplication is only `halo` rows per tile).
    x = jnp.stack([x[:, r * TILE_H: r * TILE_H + TH_in] for r in range(nr)], axis=1)
    # (N, nr, TH_in, S, Wph, S, Cp) -> (N*nr, S*S, TH_in*Wph, Cp)
    x_t = x.transpose(0, 1, 3, 5, 2, 4, 6).reshape(N * nr, S * S, M_in, Cp)

    # Weight repacking (channels-last, padded).
    wd = jnp.transpose(w_dw[:, 0, :, :], (1, 2, 0)).reshape(K * K, Cin)
    wd = jnp.pad(wd, ((0, 0), (0, Cp - Cin))).astype(dtype)           # (K*K, Cp)
    wp = jnp.transpose(w_pw[:, :, 0, 0], (1, 0))
    wp = jnp.pad(wp, ((0, Cp - Cin), (0, Cop - Cout))).astype(mx_dtype)  # (Cp, Cop)

    has_bias = bias is not None
    inputs = [x_t, wd, wp]
    in_specs = [
        pl.BlockSpec((None, S * S, M_in, Cp), lambda g, co: (g, 0, 0, 0)),
        pl.BlockSpec((K * K, Cp), lambda g, co: (0, 0)),
        pl.BlockSpec((Cp, TCO), lambda g, co: (0, co)),
    ]
    if has_bias:
        b2 = jnp.pad(bias.astype(jnp.float32), (0, Cop - Cout)).reshape(1, Cop)
        inputs.append(b2)
        in_specs.append(pl.BlockSpec((1, TCO), lambda g, co: (0, co)))

    kernel = functools.partial(
        _sepconv_kernel, K=K, S=S, Wph=Wph, TILE_H=TILE_H,
        has_bias=has_bias, mx_dtype=mx_dtype)

    flops = 2 * N * Ho * Wo * Cin * (K * K + Cout)
    bytes_accessed = int((x_t.size + wd.size + wp.size * n_co) * itemsize
                         + N * nr * M_out * Cop * itemsize)

    out_flat = pl.pallas_call(
        kernel,
        out_shape=jax.ShapeDtypeStruct((N * nr, M_out, Cop), dtype),
        grid_spec=pltpu.PrefetchScalarGridSpec(
            num_scalar_prefetch=0,
            grid=(N * nr, n_co),               # g parallel, co sequential (acc reuse)
            in_specs=in_specs,
            out_specs=pl.BlockSpec((None, M_out, TCO), lambda g, co: (g, 0, co)),
            scratch_shapes=[pltpu.VMEM((M_out, Cp), jnp.float32)],
        ),
        compiler_params=pltpu.CompilerParams(
            dimension_semantics=("parallel", "arbitrary"),
            vmem_limit_bytes=vmem_limit,
        ),
        cost_estimate=pl.CostEstimate(
            flops=flops, transcendentals=0, bytes_accessed=bytes_accessed),
    )(*inputs)

    # Undo the flattening / padding and go back to NCHW.
    out = out_flat.reshape(N, nr, TILE_H, Wph, Cop)[:, :, :, :Wo, :Cout]
    out = out.reshape(N, Ho_pad, Wo, Cout)[:, :Ho]
    return jnp.transpose(out, (0, 3, 1, 2))


def _reference(x_nchw, w_dw, w_pw, bias, *, kernel_size, stride, padding):
    """Pure-JAX reference (matches nn.Conv2d semantics)."""
    Cin = x_nchw.shape[1]
    dn = lax.conv_dimension_numbers(x_nchw.shape, w_dw.shape, ("NCHW", "OIHW", "NCHW"))
    y = lax.conv_general_dilated(
        x_nchw, w_dw, window_strides=(stride, stride),
        padding=[(padding, padding), (padding, padding)],
        dimension_numbers=dn, feature_group_count=Cin)
    dn2 = lax.conv_dimension_numbers(y.shape, w_pw.shape, ("NCHW", "OIHW", "NCHW"))
    y = lax.conv_general_dilated(
        y, w_pw, window_strides=(1, 1), padding=[(0, 0), (0, 0)],
        dimension_numbers=dn2)
    if bias is not None:
        y = y + bias.reshape(1, -1, 1, 1)
    return y


if __name__ == "__main__":
    def run_case(N, Cin, Cout, H, W, K, S, P, use_bias, tile_h, cout_tile, key):
        k_x, k_dw, k_pw, k_b = jax.random.split(key, 4)
        x = jax.random.normal(k_x, (N, Cin, H, W), dtype=jnp.float32)
        w_dw = jax.random.normal(k_dw, (Cin, 1, K, K), dtype=jnp.float32) * 0.1
        w_pw = jax.random.normal(k_pw, (Cout, Cin, 1, 1), dtype=jnp.float32) * 0.1
        bias = (jax.random.normal(k_b, (Cout,), dtype=jnp.float32) * 0.1
                if use_bias else None)

        out = separable_conv(x, w_dw, w_pw, bias, kernel_size=K, stride=S,
                             padding=P, tile_h=tile_h, cout_tile=cout_tile)
        out = jax.block_until_ready(out)

        ref = _reference(x, w_dw, w_pw, bias, kernel_size=K, stride=S, padding=P)
        assert out.shape == ref.shape, (out.shape, ref.shape)
        err = float(jnp.max(jnp.abs(out - ref)))
        assert bool(jnp.allclose(out, ref, atol=2e-4, rtol=2e-4)), err

    key = jax.random.PRNGKey(0)
    k1, k2, k3 = jax.random.split(key, 3)

    # Case 1: the spec configuration (k=3, stride=1, padding=1, bias), auto tiling.
    run_case(2, 4, 8, 16, 16, 3, 1, 1, True, None, None, k1)
    # Case 2: same configuration, forced uneven row tiling (exercises halo'd tiles).
    run_case(2, 4, 8, 16, 16, 3, 1, 1, True, 6, None, k2)
    # Case 3: stride 2, odd spatial size, Cout > 128 with forced Cout tiling
    # (exercises the depthwise-acc reuse across the "arbitrary" co axis), no bias.
    run_case(1, 5, 260, 9, 9, 3, 2, 1, False, 2, 128, k3)

    print("KERNEL_OK")
</pallas_src>

<mosaic_0001>
module attributes {stable_mosaic.version = 11 : i64} {
  func.func @_sepconv_kernel(%arg0: i32, %arg1: i32, %arg2: memref<1x1x432x128xf32, #tpu.memory_space<vmem>>, %arg3: memref<9x128xf32, #tpu.memory_space<vmem>>, %arg4: memref<128x128xf32, #tpu.memory_space<vmem>>, %arg5: memref<1x128xf32, #tpu.memory_space<vmem>>, %arg6: memref<1x384x128xf32, #tpu.memory_space<vmem>>, %arg7: memref<384x128xf32, #tpu.memory_space<vmem>>) attributes {dimension_semantics = [#tpu.dimension_semantics<parallel>, #tpu.dimension_semantics<arbitrary>], iteration_bounds = array<i64: 2, 1>, scalar_prefetch = 0 : i64, scratch_operands = 1 : i64, tpu.core_type = #tpu.core_type<tc>, window_params = [{transform_indices = @transform_0, window_bounds = array<i64: 1, 1, 432, 128>}, {pipeline_mode = #tpu.pipeline_mode<synchronous>, transform_indices = @transform_1, window_bounds = array<i64: 9, 128>}, {transform_indices = @transform_2, window_bounds = array<i64: 128, 128>}, {transform_indices = @transform_3, window_bounds = array<i64: 1, 128>}, {transform_indices = @transform_4, window_bounds = array<i64: 1, 384, 128>}]} {
    %c0_i32 = arith.constant 0 : i32
    %0 = arith.cmpi eq, %arg1, %c0_i32 : i32
    %1 = arith.extui %0 : i1 to i32
    %c0_i32_0 = arith.constant 0 : i32
    %2 = arith.cmpi ne, %1, %c0_i32_0 : i32
    scf.if %2 {
      %c0_9 = arith.constant 0 : index
      %c0_10 = arith.constant 0 : index
      %12 = vector.load %arg3[%c0_9, %c0_10] : memref<9x128xf32, #tpu.memory_space<vmem>>, vector<9x128xf32>
      %cst_11 = arith.constant 0.000000e+00 : f32
      %13 = vector.broadcast %cst_11 : f32 to vector<384x128xf32>
      %c0_12 = arith.constant 0 : index
      %c0_13 = arith.constant 0 : index
      %c0_14 = arith.constant 0 : index
      %c0_15 = arith.constant 0 : index
      %14 = vector.load %arg2[%c0_12, %c0_13, %c0_14, %c0_15] : memref<1x1x432x128xf32, #tpu.memory_space<vmem>>, vector<1x1x432x128xf32>
      %15 = vector.shape_cast %14 : vector<1x1x432x128xf32> to vector<432x128xf32>
      %16 = vector.extract_strided_slice %15 {offsets = [0, 0], sizes = [384, 128], strides = [1, 1]} : vector<432x128xf32> to vector<384x128xf32>
      %17 = vector.extract_strided_slice %12 {offsets = [0, 0], sizes = [1, 128], strides = [1, 1]} : vector<9x128xf32> to vector<1x128xf32>
      %18 = vector.broadcast %17 : vector<1x128xf32> to vector<384x128xf32>
      %19 = arith.mulf %16, %18 : vector<384x128xf32>
      %20 = arith.addf %13, %19 : vector<384x128xf32>
      %c431_i32 = arith.constant 431 : i32
      %21 = tpu.dynamic_rotate %15 by %c431_i32 dim 0 : vector<432x128xf32>, i32 -> vector<432x128xf32>
      %22 = vector.extract_strided_slice %21 {offsets = [0, 0], sizes = [384, 128], strides = [1, 1]} : vector<432x128xf32> to vector<384x128xf32>
      %23 = vector.extract_strided_slice %12 {offsets = [1, 0], sizes = [1, 128], strides = [1, 1]} : vector<9x128xf32> to vector<1x128xf32>
      %24 = vector.broadcast %23 : vector<1x128xf32> to vector<384x128xf32>
      %25 = arith.mulf %22, %24 : vector<384x128xf32>
      %26 = arith.addf %20, %25 : vector<384x128xf32>
      %c430_i32 = arith.constant 430 : i32
      %27 = tpu.dynamic_rotate %15 by %c430_i32 dim 0 : vector<432x128xf32>, i32 -> vector<432x128xf32>
      %28 = vector.extract_strided_slice %27 {offsets = [0, 0], sizes = [384, 128], strides = [1, 1]} : vector<432x128xf32> to vector<384x128xf32>
      %29 = vector.extract_strided_slice %12 {offsets = [2, 0], sizes = [1, 128], strides = [1, 1]} : vector<9x128xf32> to vector<1x128xf32>
      %30 = vector.broadcast %29 : vector<1x128xf32> to vector<384x128xf32>
      %31 = arith.mulf %28, %30 : vector<384x128xf32>
      %32 = arith.addf %26, %31 : vector<384x128xf32>
      %33 = vector.extract_strided_slice %15 {offsets = [24, 0], sizes = [384, 128], strides = [1, 1]} : vector<432x128xf32> to vector<384x128xf32>
      %34 = vector.extract_strided_slice %12 {offsets = [3, 0], sizes = [1, 128], strides = [1, 1]} : vector<9x128xf32> to vector<1x128xf32>
      %35 = vector.broadcast %34 : vector<1x128xf32> to vector<384x128xf32>
      %36 = arith.mulf %33, %35 : vector<384x128xf32>
      %37 = arith.addf %32, %36 : vector<384x128xf32>
      %38 = vector.extract_strided_slice %21 {offsets = [24, 0], sizes = [384, 128], strides = [1, 1]} : vector<432x128xf32> to vector<384x128xf32>
      %39 = vector.extract_strided_slice %12 {offsets = [4, 0], sizes = [1, 128], strides = [1, 1]} : vector<9x128xf32> to vector<1x128xf32>
      %40 = vector.broadcast %39 : vector<1x128xf32> to vector<384x128xf32>
      %41 = arith.mulf %38, %40 : vector<384x128xf32>
      %42 = arith.addf %37, %41 : vector<384x128xf32>
      %43 = vector.extract_strided_slice %27 {offsets = [24, 0], sizes = [384, 128], strides = [1, 1]} : vector<432x128xf32> to vector<384x128xf32>
      %44 = vector.extract_strided_slice %12 {offsets = [5, 0], sizes = [1, 128], strides = [1, 1]} : vector<9x128xf32> to vector<1x128xf32>
      %45 = vector.broadcast %44 : vector<1x128xf32> to vector<384x128xf32>
      %46 = arith.mulf %43, %45 : vector<384x128xf32>
      %47 = arith.addf %42, %46 : vector<384x128xf32>
      %48 = vector.extract_strided_slice %15 {offsets = [48, 0], sizes = [384, 128], strides = [1, 1]} : vector<432x128xf32> to vector<384x128xf32>
      %49 = vector.extract_strided_slice %12 {offsets = [6, 0], sizes = [1, 128], strides = [1, 1]} : vector<9x128xf32> to vector<1x128xf32>
      %50 = vector.broadcast %49 : vector<1x128xf32> to vector<384x128xf32>
      %51 = arith.mulf %48, %50 : vector<384x128xf32>
      %52 = arith.addf %47, %51 : vector<384x128xf32>
      %53 = vector.extract_strided_slice %21 {offsets = [48, 0], sizes = [384, 128], strides = [1, 1]} : vector<432x128xf32> to vector<384x128xf32>
      %54 = vector.extract_strided_slice %12 {offsets = [7, 0], sizes = [1, 128], strides = [1, 1]} : vector<9x128xf32> to vector<1x128xf32>
      %55 = vector.broadcast %54 : vector<1x128xf32> to vector<384x128xf32>
      %56 = arith.mulf %53, %55 : vector<384x128xf32>
      %57 = arith.addf %52, %56 : vector<384x128xf32>
      %58 = vector.extract_strided_slice %27 {offsets = [48, 0], sizes = [384, 128], strides = [1, 1]} : vector<432x128xf32> to vector<384x128xf32>
      %59 = vector.extract_strided_slice %12 {offsets = [8, 0], sizes = [1, 128], strides = [1, 1]} : vector<9x128xf32> to vector<1x128xf32>
      %60 = vector.broadcast %59 : vector<1x128xf32> to vector<384x128xf32>
      %61 = arith.mulf %58, %60 : vector<384x128xf32>
      %62 = arith.addf %57, %61 : vector<384x128xf32>
      %c0_16 = arith.constant 0 : index
      %c0_17 = arith.constant 0 : index
      %63 = vector.load %arg7[%c0_16, %c0_17] : memref<384x128xf32, #tpu.memory_space<vmem>>, vector<384x128xf32>
      tpu.vector_store %arg7[%c0_16, %c0_17], %62 {strides = array<i32>} : memref<384x128xf32, #tpu.memory_space<vmem>>, vector<384x128xf32>,
    } else {
    }
    %c0 = arith.constant 0 : index
    %c0_1 = arith.constant 0 : index
    %3 = vector.load %arg7[%c0, %c0_1] : memref<384x128xf32, #tpu.memory_space<vmem>>, vector<384x128xf32>
    %c0_2 = arith.constant 0 : index
    %c0_3 = arith.constant 0 : index
    %4 = vector.load %arg4[%c0_2, %c0_3] : memref<128x128xf32, #tpu.memory_space<vmem>>, vector<128x128xf32>
    %cst = arith.constant dense<0.000000e+00> : vector<384x128xf32>
    %5 = tpu.matmul %3, %4, %cst {dimension_numbers = #tpu.dot_dimension_numbers<[1], [0], [0], [1], [0, 0, 1, 1], [], []>} : vector<384x128xf32>, vector<128x128xf32>, vector<384x128xf32> -> vector<384x128xf32>
    %c0_4 = arith.constant 0 : index
    %c0_5 = arith.constant 0 : index
    %6 = vector.load %arg5[%c0_4, %c0_5] : memref<1x128xf32, #tpu.memory_space<vmem>>, vector<1x128xf32>
    %7 = vector.broadcast %6 : vector<1x128xf32> to vector<384x128xf32>
    %8 = arith.addf %5, %7 : vector<384x128xf32>
    %c0_6 = arith.constant 0 : index
    %c0_7 = arith.constant 0 : index
    %c0_8 = arith.constant 0 : index
    %9 = vector.load %arg6[%c0_6, %c0_7, %c0_8] : memref<1x384x128xf32, #tpu.memory_space<vmem>>, vector<1x384x128xf32>
    %10 = vector.shape_cast %9 : vector<1x384x128xf32> to vector<384x128xf32>
    %11 = vector.shape_cast %8 : vector<384x128xf32> to vector<1x384x128xf32>
    tpu.vector_store %arg6[%c0_6, %c0_7, %c0_8], %11 {strides = array<i32>} : memref<1x384x128xf32, #tpu.memory_space<vmem>>, vector<1x384x128xf32>,
    return
  }
  func.func @transform_0(%arg0: i32, %arg1: i32) -> (i32, i32, i32, i32) {
    %c0_i32 = arith.constant 0 : i32
    %c0_i32_0 = arith.constant 0 : i32
    %c0_i32_1 = arith.constant 0 : i32
    %c0_i32_2 = arith.constant 0 : i32
    return %arg0, %c0_i32, %c0_i32_0, %c0_i32_1 : i32, i32, i32, i32
  }
  func.func @transform_1(%arg0: i32, %arg1: i32) -> (i32, i32) {
    %c0_i32 = arith.constant 0 : i32
    %c0_i32_0 = arith.constant 0 : i32
    %c0_i32_1 = arith.constant 0 : i32
    return %c0_i32, %c0_i32_0 : i32, i32
  }
  func.func @transform_2(%arg0: i32, %arg1: i32) -> (i32, i32) {
    %c0_i32 = arith.constant 0 : i32
    %c0_i32_0 = arith.constant 0 : i32
    return %c0_i32, %arg1 : i32, i32
  }
  func.func @transform_3(%arg0: i32, %arg1: i32) -> (i32, i32) {
    %c0_i32 = arith.constant 0 : i32
    %c0_i32_0 = arith.constant 0 : i32
    return %c0_i32, %arg1 : i32, i32
  }
  func.func @transform_4(%arg0: i32, %arg1: i32) -> (i32, i32, i32) {
    %c0_i32 = arith.constant 0 : i32
    %c0_i32_0 = arith.constant 0 : i32
    return %arg0, %c0_i32, %arg1 : i32, i32, i32
  }
}

</mosaic_0001>

<bundles_post_ra>
// kernel: tpu_custom_call.1
= control target key start
LH: loop header
LB: loop body
LE: loop exit
PB: predicated region body
PF: predicated region fallthrough
CT: control target
= control target key end

     0   :  { %9 = vsyncpa [#allocation4], 0  ;;  %s4761_s0 = inlined_call_operand.hbm [shape: f32[2,1,432,128], index: 0, kind: input, shape index: {}]   ;;  %s4762_s1 = inlined_call_operand.hbm [shape: f32[9,128], index: 1, kind: input, shape index: {}]   ;;  %s4763_s2 = inlined_call_operand.hbm [shape: f32[128,128], index: 2, kind: input, shape index: {}]   ;;  %s4764_s3 = inlined_call_operand.hbm [shape: f32[1,128], index: 3, kind: input, shape index: {}]   ;;  %s4765_s4 = inlined_call_operand.hbm [shape: f32[2,384,128], index: 4, kind: output, shape index: {}]  }
   0x1   :  { %11 = vsyncpa [#allocation4 + $0x1], 0 }
   0x2   :  { %12 = vsyncpa [#allocation7], 0 }
   0x3   :  { %13 = vsyncpa [#allocation10], 0 }
   0x4   :  { %14 = vsyncpa [#allocation5], 0 }
   0x5   :  { %16 = vsyncpa [#allocation5 + $0x1], 0  ;;  %s2652_s15 = smov 0   ;;  %s2654_s16 = smov 0  }
   0x6   :  { %s2656_s17 = smov 0   ;;  %s2658_s18 = smov 0  }
   0x7   :  { %s2660_s19 = smov 0   ;;  %s2662_s20 = smov 0  }
   0x8 LB: > { %s2069_s21 = sadd.s32 4294967295, %s2616_s20   ;;  %s2070_s22 = sadd.s32 4294967294, %s2616_s20   ;;  %s2616_s20 = sphi %s2662_s20, %s22_s20   ;;  %s2612_s19 = sphi %s2660_s19, %s4946_s19   ;;  %s2608_s18 = sphi %s2658_s18, %s4945_s18   ;;  %s2604_s17 = sphi %s2656_s17, %s4944_s17   ;;  %s2600_s16 = sphi %s2654_s16, %s4943_s16   ;;  %s2596_s15 = sphi %s2652_s15, %s4942_s15  }
   0x9   : > { %p54_p0 = scmp.ne.s32.totalorder %s2600_s16, %s2596_s15  ;;  %p2686_p1 = scmp.eq.s32.totalorder %s2069_s21, 0 }
   0xa   : > { %p2690_p2 = scmp.eq.s32.totalorder %s2069_s21, 1  ;;  %p159_p3 = scmp.eq.s32.totalorder %s2070_s22, 1 }
   0xb   : > { %s4825_s23 = scalar_select %p2686_p1, 1, 0 }
   0xc   : > { %s4826_s24 = scalar_select %p2690_p2, 1, 0 }
   0xd   : > { %p2696_p4 = por %p2686_p1, %p54_p0  ;;  %p2071_p5 = scmp.ge.s32.totalorder %s2616_s20, 1 }
   0xe   : > { %p2701_p6 = por %p159_p3, %p54_p0  ;;  %p166_p7 = scmp.lt.s32.totalorder %s2616_s20, 3 }
   0xf   : > { %s4827_s25 = scalar_select %p2696_p4, 1, 0 }
  0x10   : > { %s4828_s26 = scalar_select %p2701_p6, 1, 0 }
  0x11   : > { %p2706_p8 = pnand %p2071_p5, %p166_p7  ;;  %s2618_s28 = smov [#allocation6]  }
  0x12   : > { %4829 = sst [smem:[#allocation16_spill]] %s4828_s26  ;;  %s178_s29 = sshll.u32 %s2618_s28, 4  ;;  %s2710_s29 = int_to_ptr.vmem [resolvable:$true] %s178_s29 }
  0x13   : > { %s4830_s27 = scalar_select %p2706_p8, 1, 0 }
  0x14   : > { %p2323_p9 = pneg %p2706_p8  ;;  %s2619_s5 = smov [#allocation8]  }
  0x15   : > { %s193_s6 = sshll.u32 %s2619_s5, 4  ;;  %s2620_s7 = smov [#allocation9]   ;;  %s2721_s6 = int_to_ptr.vmem [resolvable:$true] %s193_s6 }
  0x16   : > { %p2717_p11 = pnand %p2323_p9, %p2686_p1  ;;  %s2723_s8 = sshll.u32 %s2620_s7, 4  ;;  %s210_s8 = int_to_ptr.vmem [resolvable:$true] %s2723_s8 }
  0x17   : > { %s2412_s11 = scalar_lea.hbm %s4762_s1, 256 }
  0x18   : > { %p2413_p12 = scmp.ne.s32.totalorder %s4762_s1, %s2412_s11  ;;  %p2733_p13 = pneg %p2717_p11 }
  0x19   : > { %p2419_p5 = scmp.lt.u32.totalorder %s2412_s11, %s4762_s1 }
  0x1a   : > { %p2415_p0 = pnand %p2733_p13, %p2413_p12 }
  0x1c   : > { %p2416_p3 = pneg %p2415_p0 }
  0x1e   : > { %p2421_p7 = pnand %p2419_p5, %p2416_p3 }
  0x20   : > { %2424 = shalt.err (!%p2421_p7)
}
  0x21   : > { %s2425_s28 = scalar_lea.vmem %s2710_s29, 256  ;;  %p2433_p1 = scmp.lt.s32.totalorder %s2710_s29, %s2710_s29 }
  0x22   : > { %p2426_p9 = scmp.ne.s32.totalorder %s2710_s29, %s2425_s28  ;;  %p2434_p4 = scmp.lt.s32.totalorder %s2425_s28, %s2425_s28 }
  0x24   : > { %p2428_p10 = pnand %p2426_p9, %p2733_p13  ;;  %p2435_p12 = por %p2434_p4, %p2433_p1 }
  0x26   : > { %p2429_p6 = pneg %p2428_p10 }
  0x28   : > { %p2436_p0 = pnand %p2435_p12, %p2429_p6 }
  0x2a   : > { %2439 = shalt.err (!%p2436_p0)
}
  0x2b   : > { %s4771_s5 = smov 128   ;;  %s2622_s7 = smov 8  }
  0x2c   : > { %2326 = dma.hbm_to_vmem [thread:$0]  (!%p2717_p11), %s4762_s1, 256, %s2710_s29, [#allocation7], %s4771_s5, %s4771_s5, %s2622_s7  }
  0x2d   : > { %s2440_s13 = scalar_lea.hbm %s4763_s2, 2048 }
  0x2e   : > { %p2441_p1 = scmp.ne.s32.totalorder %s4763_s2, %s2440_s13  ;;  %p2447_p10 = scmp.lt.u32.totalorder %s2440_s13, %s4763_s2 }
  0x30   : > { %p2443_p4 = pnand %p2441_p1, %p2733_p13 }
  0x32   : > { %p2444_p6 = pneg %p2443_p4 }
  0x34   : > { %p2449_p3 = pnand %p2447_p10, %p2444_p6 }
  0x36   : > { %2452 = shalt.err (!%p2449_p3)
}
  0x37   : > { %s2453_s29 = scalar_lea.vmem %s2721_s6, 2048  ;;  %p2461_p12 = scmp.lt.s32.totalorder %s2721_s6, %s2721_s6 }
  0x38   : > { %p2454_p5 = scmp.ne.s32.totalorder %s2721_s6, %s2453_s29  ;;  %p2462_p0 = scmp.lt.s32.totalorder %s2453_s29, %s2453_s29 }
  0x3a   : > { %p2456_p7 = pnand %p2454_p5, %p2733_p13  ;;  %p2463_p1 = por %p2462_p0, %p2461_p12 }
  0x3c   : > { %p2457_p9 = pneg %p2456_p7 }
  0x3e   : > { %p2464_p4 = pnand %p2463_p1, %p2457_p9 }
  0x40   : > { %2467 = shalt.err (!%p2464_p4)
}
  0x41   : > { %2329 = dma.hbm_to_vmem [thread:$0]  (!%p2717_p11), %s4763_s2, 2048, %s2721_s6, [#allocation7], %s4771_s5, %s4771_s5, %s2622_s7  }
  0x42   : > { %s2468_s12 = scalar_lea.hbm %s4764_s3, 16 }
  0x43   : > { %p2469_p6 = scmp.ne.s32.totalorder %s4764_s3, %s2468_s12  ;;  %p2475_p5 = scmp.lt.u32.totalorder %s2468_s12, %s4764_s3 }
  0x45   : > { %p2471_p10 = pnand %p2469_p6, %p2733_p13 }
  0x47   : > { %p2472_p3 = pneg %p2471_p10 }
  0x49   : > { %p2477_p7 = pnand %p2475_p5, %p2472_p3 }
  0x4b   : > { %2480 = shalt.err (!%p2477_p7)
}
  0x4c   : > { %s2481_s29 = scalar_lea.vmem %s210_s8, 16  ;;  %s2488_s6 = scalar_lea.vmem %s210_s8, 32 }
  0x4d   : > { %p2482_p9 = scmp.ne.s32.totalorder %s210_s8, %s2481_s29  ;;  %p2489_p1 = scmp.lt.s32.totalorder %s210_s8, %s210_s8 }
  0x4e   : > { %p2490_p4 = scmp.lt.s32.totalorder %s2488_s6, %s2481_s29 }
  0x4f   : > { %p2484_p12 = pnand %p2482_p9, %p2733_p13 }
  0x50   : > { %p2491_p8 = por %p2490_p4, %p2489_p1 }
  0x51   : > { %p2485_p0 = pneg %p2484_p12 }
  0x53   : > { %p2492_p2 = pnand %p2491_p8, %p2485_p0 }
  0x55   : > { %2495 = shalt.err (!%p2492_p2)
}
  0x56   : > { %2332 = dma.hbm_to_vmem [thread:$0]  (!%p2717_p11), %s4764_s3, 16, %s210_s8, [#allocation10]  }
  0x57   : > { %s41_s14 = sadd.s32 1, %s2604_s17  ;;  %s34_s10 = sadd.s32 1, %s2612_s19 }
  0x58   : > { %p48_p2 = scmp.ne.s32.totalorder %s2604_s17, %s2600_s16  ;;  %p36_p8 = scmp.ge.s32.totalorder %s34_s10, 2 }
  0x59   : > { %p49_p13 = scmp.eq.s32.totalorder %s2616_s20, 0  ;;  %p4833_p6 = scmp.ne.s32.totalorder %s4826_s24, 0 }
  0x5a   : > { %p2344_p3 = scmp.lt.s32.totalorder %s2616_s20, 2  ;;  %s4948_s10 = smov (%p36_p8, %s34_s10), 0 }
  0x5b   : > { %p2809_p10 = por %p4833_p6, %p48_p2  ;;  %p50_p5 = por %p49_p13, %p48_p2 }
  0x5c   : > { %s220_s11 = sand.u32 1, %s2604_s17   ;;  %s38_s12 = ssub.s32 %s2612_s19, %s4948_s10 }
  0x5d   : > { %p39_p7 = scmp.eq.s32.totalorder %s38_s12, 0  ;;  %s2302_s8 = smul.u32 432, %s220_s11 }
  0x5e   : > { %s2303_s13 = smul.u32 6912, %s2612_s19  ;;  %p2820_p11 = pnand %p2344_p3, %p50_p5 }
  0x5f   : > { %s2825_s24 = scalar_select %p39_p7, %s2604_s17, %s41_s14  }
  0x60   : > { %s2830_s29 = scalar_lea.hbm %s4761_s0, %s2303_s13  ;;  %s224_s6 = scalar_lea.vmem [#allocation3], %s2302_s8 }
  0x61   : > { %s231_s26 = sshll.u32 %s224_s6, 4  ;;  %s2834_s9 = scalar_lea.sflag [#allocation4], %s220_s11  ;;  %s2832_s26 = int_to_ptr.vmem [resolvable:$true] %s231_s26 }
  0x62   : > { %s2496_s12 = scalar_lea.hbm %s2830_s29, 6912  ;;  %p2498_p12 = pneg %p2820_p11 }
  0x63   : > { %p2497_p9 = scmp.ne.s32.totalorder %s2830_s29, %s2496_s12  ;;  %s2501_s22 = scalar_lea.hbm %s4761_s0, 13824 }
  0x64   : > { %p2502_p4 = scmp.lt.u32.totalorder %s2830_s29, %s4761_s0  ;;  %p2503_p2 = scmp.lt.u32.totalorder %s2501_s22, %s2496_s12 }
  0x65   : > { %p2499_p0 = pnand %p2498_p12, %p2497_p9  ;;  %p2505_p13 = scmp.lt.u32.totalorder %s2496_s12, %s2830_s29 }
  0x66   : > { %p2504_p8 = por %p2503_p2, %p2502_p4 }
  0x67   : > { %p2500_p1 = pneg %p2499_p0 }
  0x68   : > { %p2506_p6 = por %p2505_p13, %p2504_p8 }
  0x6a   : > { %p2507_p3 = pnand %p2506_p6, %p2500_p1 }
  0x6c   : > { %2510 = shalt.err (!%p2507_p3)
}
  0x6d   : > { %s2511_s11 = scalar_lea.vmem %s2832_s26, 6912  ;;  %s2623_s8 = smov [#allocation3]  }
  0x6e   : > { %p2512_p5 = scmp.ne.s32.totalorder %s2832_s26, %s2511_s11  ;;  %s2516_s6 = sshll.u32 %s2623_s8, 4  ;;  %s2517_s6 = int_to_ptr.vmem [resolvable:$false] %s2516_s6 }
  0x6f   : > { %s2518_s5 = scalar_lea.vmem %s2517_s6, 13824  ;;  %p2519_p0 = scmp.lt.s32.totalorder %s2832_s26, %s2517_s6 }
  0x70   : > { %p2514_p7 = pnand %p2512_p5, %p2498_p12  ;;  %p2520_p4 = scmp.lt.s32.totalorder %s2518_s5, %s2511_s11 }
  0x72   : > { %p2515_p9 = pneg %p2514_p7  ;;  %p2521_p2 = por %p2520_p4, %p2519_p0 }
  0x74   : > { %p2522_p8 = pnand %p2521_p2, %p2515_p9 }
  0x76   : > { %2525 = shalt.err (!%p2522_p8)
}
  0x77   : > { %s4836_s12 = smov 128   ;;  %p4837_p12 = scmp.ne.s32.totalorder %s4830_s27, 0 }
  0x78   : > { %2336 = dma.hbm_to_vmem [thread:$0]  (!%p2820_p11), %s2830_s29, 6912, %s2832_s26, %s2834_s9, %s4836_s12, %s4836_s12, %s2622_s7  }
  0x79   : > { %243 = sbr.rel (%p4837_p12) target bundleno = 651 (0x28b), region = 36 }
  0x80   : > { %s2868_s14 = sand.u32 1, %s2600_s16   ;;  %p4838_p1 = scmp.ne.s32.totalorder %s4827_s25, 0 }
  0x81   : > { %s2304_s13 = smul.u32 432, %s2868_s14  ;;  %s246_s22 = scalar_lea.sflag [#allocation4], %s2868_s14 }
  0x83   : > { %s2872_s28 = scalar_lea.vmem [#allocation3], %s2304_s13 }
  0x84   : > { %2579 = dma.done.wait (%p4838_p1), %s246_s22, 6912  }
  0x85   : > { %2581 = vsyncadd (%p4838_p1), %s246_s22, 4294960384  ;;  %p4839_p11 = scmp.ne.s32.totalorder %s4825_s23, 0 }
  0x87   : > { %2583 = dma.done.wait (%p4839_p11), [#allocation7], 2304  }
  0x88   : > { %2585 = vsyncadd (%p4839_p11), [#allocation7], 4294964992 }
  0x89   : > { %2587 = dma.done.wait (%p4839_p11), [#allocation10], 16  }
  0x8a   : > { %2589 = vsyncadd (%p4839_p11), [#allocation10], 4294967280  ;;  %v346_v0 = vlaneseq  ;;  %v1562_v2 = vld [vmem:[#allocation8] sm:$0xff]  ;;  %v1563_v3 = vld [vmem:[#allocation8 + $0x8] sm:$0xff]  ;;  %s2305_s23 = smul.u32 384, %s2868_s14  ;;  %s2624_s11 = smov [#allocation11]  }
  0x8b   : > { %v1564_v4 = vld [vmem:[#allocation8 + $0x10] sm:$0xff]  ;;  %v2254_v5 = vpack.c.bf16 %v1563_v3, %v1562_v2  ;;  %v1565_v6 = vld [vmem:[#allocation8 + $0x18] sm:$0xff]  ;;  %v1566_v8 = vld [vmem:[#allocation8 + $0x20] sm:$0xff]  ;;  %s2306_s27 = smul.u32 6144, %s2608_s18  ;;  %s1939_s18 = scalar_lea.sflag [#allocation5], %s2868_s14 }
  0x8c   : > { %v2886_v1 = vshrl.u32 %v346_v0, 7  ;;  %v2258_v7 = vpack.c.bf16 %v1565_v6, %v1564_v4  ;;  %v1567_v9 = vld [vmem:[#allocation8 + $0x28] sm:$0xff]  ;;  %v1568_v12 = vld [vmem:[#allocation8 + $0x30] sm:$0xff]  ;;  %v1569_v13 = vld [vmem:[#allocation8 + $0x38] sm:$0xff]  ;;  %s4609_s25 = scalar_lea.vmem [#allocation11], %s2305_s23  ;;  %s2530_s8 = sshll.u32 %s2624_s11, 4  ;;  %s2531_s8 = int_to_ptr.vmem [resolvable:$false] %s2530_s8 }
  0x8d   : > { %2255 = vmatprep.subr.bf16.mxu0 %v2254_v5  ;;  %2286 = vmatprep.subr.bf16.mxu1 %v2254_v5  ;;  %v1570_v14 = vld [vmem:[#allocation8 + $0x40] sm:$0xff]  ;;  %v1571_v15 = vld [vmem:[#allocation8 + $0x48] sm:$0xff]  ;;  %v2262_v17 = vpack.c.bf16 %v1567_v9, %v1566_v8  ;;  %v2893_v18 = vld [vmem:[#allocation6] sm:$0xff]  ;;  %v2266_v28 = vpack.c.bf16 %v1569_v13, %v1568_v12  ;;  %s1953_s7 = sshll.u32 %s4609_s25, 4  ;;  %s4707_s26 = scalar_lea.hbm %s4765_s4, %s2306_s27  ;;  %s4709_s7 = int_to_ptr.vmem [resolvable:$true] %s1953_s7 }
  0x8e   : > { %v348_v10 = vsub.s32 0, %v2886_v1  ;;  %v559_v11 = vsub.s32 1, %v2886_v1  ;;  %2257 = vmatpush3.bf16.msra.mxu0 %v2254_v5  ;;  %2294 = vmatpush3.bf16.msra.mxu1 %v2254_v5  ;;  %vm502_vm0 = vcmp.lt.s32.totalorder %v2886_v1, 7  ;;  %vm711_vm1 = vcmp.lt.s32.totalorder %v2886_v1, 6  ;;  %v2899_v22 = vld [vmem:[%s2872_s28] sm:$0xff]  ;;  %v2902_v23 = vld [vmem:[%s2872_s28 + $0x8] sm:$0xff]  ;;  %p2533_p5 = scmp.lt.s32.totalorder %s4709_s7, %s2531_s8 }
  0x8f   : > { %v768_v16 = vsub.s32 2, %v2886_v1  ;;  %2259 = vmatprep.subr.bf16.mxu0 %v2258_v7  ;;  %2287 = vmatprep.subr.bf16.mxu1 %v2258_v7  ;;  %v868_v19 = vsub.s32 3, %v2886_v1  ;;  %v968_v20 = vsub.s32 4, %v2886_v1  ;;  %v1068_v21 = vsub.s32 5, %v2886_v1  ;;  %4840 = vst [vmem:[#allocation17_spill] sm:$0xff] %v2899_v22  ;;  %v2915_v30 = vld [vmem:[%s2872_s28 + $0x18] sm:$0xff] }
  0x90   : > { %v2905_v24 = vrot.slane %v2893_v18, %v348_v10  ;;  %v2908_v25 = vrot.slane %v2893_v18, %v559_v11  ;;  %v1168_v26 = vsub.s32 6, %v2886_v1  ;;  %v1268_v27 = vsub.s32 7, %v2886_v1  ;;  %v2918_v31 = vld [vmem:[%s2872_s28 + $0x20] sm:$0xff]  ;;  %v2921_v32 = vld [vmem:[%s2872_s28 + $0x30] sm:$0xff]  ;;  %v2926_v35 = vld [vmem:[%s2872_s28 + $0x38] sm:$0xff]  ;;  %s2526_s9 = scalar_lea.vmem %s4709_s7, 6144 }
  0x91   : > { %v2912_v29 = vpack.c.bf16 %v1571_v15, %v1570_v14  ;;  %v4773_v33 = vrot.slane %v2899_v22, 1  ;;  %v447_v34 = vrot.slane %v2902_v23, 1  ;;  %v449_v38 = vrot.slane %v2915_v30, 1  ;;  %v1572_v44 = vld [vmem:[#allocation8 + $0x50] sm:$0xff]  ;;  %v1573_v45 = vld [vmem:[#allocation8 + $0x58] sm:$0xff]  ;;  %v1574_v59 = vld [vmem:[#allocation8 + $0x60] sm:$0xff]  ;;  %p2527_p13 = scmp.ne.s32.totalorder %s4709_s7, %s2526_s9 }
  0x92   : > { %2261 = vmatpush3.bf16.msra.mxu0 %v2258_v7  ;;  %2295 = vmatpush3.bf16.msra.mxu1 %v2258_v7  ;;  %v350_v36 = vmul.f32 %v2905_v24, %v2899_v22  ;;  %v353_v37 = vmul.f32 %v2905_v24, %v2915_v30  ;;  %v2934_v39 = vrot.slane %v2893_v18, %v768_v16  ;;  %v450_v40 = vrot.slane %v2918_v31, 1  ;;  %v1575_v60 = vld [vmem:[#allocation8 + $0x68] sm:$0xff]  ;;  %v2975_v61 = vld [vmem:[%s2872_s28 + $0x10] sm:$0xff]  ;;  %v1577_v15 = vld [vmem:[#allocation8 + $0x78] sm:$0xff]  ;;  %s2532_s6 = scalar_lea.vmem %s2531_s8, 12288 }
  0x93   : > { %2263 = vmatprep.subr.bf16.mxu0 %v2262_v17  ;;  %2288 = vmatprep.subr.bf16.mxu1 %v2262_v17  ;;  %v4776_v41 = vrot.slane %v2921_v32, 1  ;;  %v453_v42 = vrot.slane %v2926_v35, 1  ;;  %v555_v43 = vsel %vm502_vm0, %v4773_v33, %v447_v34  ;;  %v356_v46 = vmul.f32 %v2905_v24, %v2921_v32  ;;  %v1576_v11 = vld [vmem:[#allocation8 + $0x70] sm:$0xff]  ;;  %p2528_p6 = pnand %p2527_p13, %p2809_p10  ;;  %p2534_p7 = scmp.lt.s32.totalorder %s2532_s6, %s2526_s9 }
  0x94   : > { %v561_v47 = vmul.f32 %v2908_v25, %v555_v43  ;;  %v4772_v48 = vrot.slane %v2899_v22, 2  ;;  %v4789_v49 = vrot.slane %v2902_v23, 2  ;;  %v552_v51 = vsel %vm502_vm0, %v449_v38, %v450_v40 }
  0x95   : > { %v2956_v50 = vsel %vm502_vm0, %v4776_v41, %v453_v42  ;;  %v660_v52 = vrot.slane %v2915_v30, 2  ;;  %v2966_v53 = vrot.slane %v2893_v18, %v868_v19  ;;  %v564_v54 = vmul.f32 %v2908_v25, %v552_v51  ;;  %p2529_p3 = pneg %p2528_p6  ;;  %p2535_p9 = por %p2534_p7, %p2533_p5 }
  0x96   : > { %2265 = vmatpush3.bf16.msra.mxu0 %v2262_v17  ;;  %2296 = vmatpush3.bf16.msra.mxu1 %v2262_v17  ;;  %v567_v55 = vmul.f32 %v2908_v25, %v2956_v50  ;;  %v609_v56 = vadd.f32 %v561_v47, %v350_v36  ;;  %v4791_v57 = vrot.slane %v2918_v31, 2  ;;  %v2972_v58 = vpack.c.bf16 %v1573_v45, %v1572_v44  ;;  %v3019_v36 = vld [vmem:[%s2872_s28 + $0xc0] sm:$0xff] }
  0x97   : > { %2267 = vmatprep.subr.bf16.mxu0 %v2266_v28  ;;  %2289 = vmatprep.subr.bf16.mxu1 %v2266_v28  ;;  %v4775_v62 = vrot.slane %v2921_v32, 2  ;;  %v4787_v63 = vrot.slane %v2926_v35, 2  ;;  %v764_v0 = vsel %vm711_vm1, %v4772_v48, %v4789_v49  ;;  %v612_v2 = vadd.f32 %v564_v54, %v353_v37  ;;  %4841 = vst [vmem:[#allocation18_spill] sm:$0xff] %v3019_v36  ;;  %v3022_v37 = vld [vmem:[%s2872_s28 + $0xc8] sm:$0xff]  ;;  %p2536_p0 = pnand %p2535_p9, %p2529_p3 }
  0x98   : > { %v615_v3 = vadd.f32 %v567_v55, %v356_v46  ;;  %v761_v4 = vsel %vm711_vm1, %v660_v52, %v4791_v57  ;;  %v770_v5 = vmul.f32 %v2934_v39, %v764_v0  ;;  %v870_v8 = vmul.f32 %v2966_v53, %v2915_v30  ;;  %v3074_v0 = vld [vmem:[%s2872_s28 + $0xf0] sm:$0xff] }
  0x99   : > { %v758_v6 = vsel %vm711_vm1, %v4775_v62, %v4787_v63  ;;  %v773_v7 = vmul.f32 %v2934_v39, %v761_v4  ;;  %v873_v9 = vmul.f32 %v2966_v53, %v2921_v32  ;;  %v3001_v10 = vpack.c.bf16 %v1575_v60, %v1574_v59 }
  0x9a   : > { %2269 = vmatpush3.bf16.msra.mxu0 %v2266_v28  ;;  %2297 = vmatpush3.bf16.msra.mxu1 %v2266_v28  ;;  %v448_v12 = vrot.slane %v2975_v61, 1  ;;  %v776_v13 = vmul.f32 %v2934_v39, %v758_v6  ;;  %v818_v14 = vadd.f32 %v770_v5, %v609_v56  ;;  %v4790_v16 = vrot.slane %v2975_v61, 2 }
  0x9b   : > { %2271 = vmatprep.subr.bf16.mxu0 %v2912_v29  ;;  %2290 = vmatprep.subr.bf16.mxu1 %v2912_v29  ;;  %v821_v17 = vadd.f32 %v773_v7, %v612_v2  ;;  %v3011_v19 = vrot.slane %v2893_v18, %v968_v20  ;;  %v3016_v28 = vrot.slane %v2893_v18, %v1068_v21  ;;  %v3035_v21 = vld [vmem:[%s2872_s28 + $0xd8] sm:$0xff]  ;;  %v4774_v56 = vrot.slane %v3019_v36, 1 }
  0x9c   : > { %v824_v43 = vadd.f32 %v776_v13, %v615_v3  ;;  %v918_v44 = vadd.f32 %v870_v8, %v818_v14  ;;  %v3027_v45 = vrot.slane %v2893_v18, %v1168_v26  ;;  %v3032_v20 = vrot.slane %v2893_v18, %v1268_v27  ;;  %v3045_v18 = vld [vmem:[#allocation6 + $0x8] ss:$0 sm:$0xff] }
  0x9d   : > { %v921_v46 = vadd.f32 %v873_v9, %v821_v17  ;;  %v970_v47 = vmul.f32 %v3011_v19, %v552_v51  ;;  %v973_v54 = vmul.f32 %v3011_v19, %v2956_v50  ;;  %v1070_v55 = vmul.f32 %v3016_v28, %v761_v4  ;;  %v3056_v51 = vld [vmem:[%s2872_s28 + $0xe0] sm:$0xff]  ;;  %v3077_v2 = vld [vmem:[%s2872_s28 + $0xf8] sm:$0xff]  ;;  %v3086_v8 = vld [vmem:[%s2872_s28 + $0xe8] sm:$0xff] }
  0x9e   : > { %2273 = vmatpush3.bf16.msra.mxu0 %v2912_v29  ;;  %2298 = vmatpush3.bf16.msra.mxu1 %v2912_v29  ;;  %v3043_v26 = vpack.c.bf16 %v1577_v15, %v1576_v11  ;;  %v3053_v27 = vsel %vm502_vm0, %v448_v12, %v449_v38  ;;  %v4778_v59 = vrot.slane %v3022_v37, 1  ;;  %v3063_v29 = vld [vmem:[%s2872_s28 + $0x48] sm:$0xff]  ;;  %v3069_v30 = vsel %vm711_vm1, %v4790_v16, %v660_v52 }
  0x9f   : > { %2275 = vmatprep.subr.bf16.mxu0 %v2972_v58  ;;  %2291 = vmatprep.subr.bf16.mxu1 %v2972_v58  ;;  %v1018_v38 = vadd.f32 %v970_v47, %v918_v44  ;;  %v1170_v60 = vmul.f32 %v3027_v45, %v2921_v32  ;;  %v473_v3 = vrot.slane %v3035_v21, 1  ;;  %v876_v4 = vmul.f32 %v2966_v53, %v3063_v29 }
  0xa0   : > { %v1021_v5 = vadd.f32 %v973_v54, %v921_v46  ;;  %v1073_v7 = vmul.f32 %v3016_v28, %v758_v6  ;;  %v1270_v52 = vmul.f32 %v3032_v20, %v2956_v50  ;;  %v1370_v11 = vmul.f32 %v3045_v18, %v758_v6  ;;  %v3118_v54 = vld [vmem:[%s2872_s28 + $0xd0] sm:$0xff] }
  0xa1   : > { %v1118_v9 = vadd.f32 %v1070_v55, %v1018_v38  ;;  %v374_v13 = vmul.f32 %v2905_v24, %v3019_v36  ;;  %v4782_v14 = vrot.slane %v3056_v51, 1  ;;  %v377_v15 = vmul.f32 %v2905_v24, %v3035_v21 }
  0xa2   : > { %2277 = vmatpush3.bf16.msra.mxu0 %v2972_v58  ;;  %2299 = vmatpush3.bf16.msra.mxu1 %v2972_v58  ;;  %v476_v50 = vrot.slane %v3074_v0, 1  ;;  %v4777_v17 = vrot.slane %v3077_v2, 1  ;;  %v3104_v6 = vsel %vm502_vm0, %v4774_v56, %v4778_v59  ;;  %v4785_v44 = vrot.slane %v3086_v8, 1 }
  0xa3   : > { %4842 = vst [vmem:[#allocation19_spill] sm:$0xff] %v3104_v6  ;;  %2279 = vmatprep.subr.bf16.mxu0 %v3001_v10  ;;  %2292 = vmatprep.subr.bf16.mxu1 %v3001_v10  ;;  %v1218_v58 = vadd.f32 %v1170_v60, %v1118_v9  ;;  %v3113_v46 = vsel %vm502_vm0, %v473_v3, %v4782_v14  ;;  %v4779_v60 = vrot.slane %v3019_v36, 2  ;;  %v4781_v9 = vrot.slane %v3022_v37, 2 }
  0xa4   : > { %4843 = vst [vmem:[#allocation20_spill] sm:$0xff] %v3113_v46  ;;  %v585_v47 = vmul.f32 %v2908_v25, %v3104_v6  ;;  %v525_v55 = vsel %vm502_vm0, %v476_v50, %v4777_v17  ;;  %v588_v38 = vmul.f32 %v2908_v25, %v3113_v46  ;;  %v3128_v48 = vadd.f32 %v876_v4, %v824_v43 }
  0xa5   : > { %v3130_v33 = vadd.f32 %v1073_v7, %v1021_v5  ;;  %v1318_v56 = vadd.f32 %v1270_v52, %v1218_v58  ;;  %v380_v62 = vmul.f32 %v2905_v24, %v3074_v0  ;;  %v3140_v41 = vsel %vm502_vm0, %v4785_v44, %v476_v50 }
  0xa6   : > { %4844 = vst [vmem:[#allocation21_spill] sm:$0xff] %v3128_v48  ;;  %2281 = vmatpush3.bf16.msra.mxu0 %v3001_v10  ;;  %2300 = vmatpush3.bf16.msra.mxu1 %v3001_v10  ;;  %4845 = vst [vmem:[#allocation22_spill] sm:$0xff] %v3140_v41  ;;  %v591_v17 = vmul.f32 %v2908_v25, %v525_v55  ;;  %v684_v43 = vrot.slane %v3035_v21, 2  ;;  %v4780_v4 = vrot.slane %v3056_v51, 2  ;;  %v4784_v7 = vrot.slane %v3118_v54, 1 }
  0xa7   : > { %2283 = vmatprep.subr.bf16.mxu0 %v3043_v26  ;;  %2293 = vmatprep.subr.bf16.mxu1 %v3043_v26  ;;  %v1418_v5 = vadd.f32 %v1370_v11, %v1318_v56  ;;  %v633_v10 = vadd.f32 %v585_v47, %v374_v13  ;;  %v636_v52 = vadd.f32 %v588_v38, %v377_v15  ;;  %v687_v58 = vrot.slane %v3074_v0, 2 }
  0xa8   : > { %v4783_v50 = vrot.slane %v3077_v2, 2  ;;  %v3154_v59 = vsel %vm711_vm1, %v684_v43, %v4780_v4  ;;  %v3162_v56 = vsel %vm711_vm1, %v4779_v60, %v4781_v9  ;;  %v4788_v11 = vrot.slane %v3118_v54, 2 }
  0xa9   : > { %4846 = vst [vmem:[#allocation23_spill] sm:$0xff] %v3154_v59  ;;  %4847 = vst [vmem:[#allocation24_spill] sm:$0xff] %v3162_v56  ;;  %2182 = vmatprep.mubr.f32.mxu0 %v1418_v5  ;;  %v794_v13 = vmul.f32 %v2934_v39, %v3162_v56  ;;  %v797_v15 = vmul.f32 %v2934_v39, %v3154_v59  ;;  %v894_v47 = vmul.f32 %v2966_v53, %v3035_v21 }
  0xaa   : > { %2285 = vmatpush3.bf16.msra.mxu0 %v3043_v26  ;;  %2301 = vmatpush3.bf16.msra.mxu1 %v3043_v26  ;;  %v639_v38 = vadd.f32 %v591_v17, %v380_v62  ;;  %v4786_v5 = vrot.slane %v3086_v8, 2  ;;  %v734_v60 = vsel %vm711_vm1, %v687_v58, %v4783_v50  ;;  %v897_v4 = vmul.f32 %v2966_v53, %v3074_v0  ;;  %v3188_v17 = vld [vmem:[%s2872_s28 + $0x28] sm:$0xff] }
  0xab   : > { %v3184_v21 = vsel %vm502_vm0, %v4784_v7, %v473_v3  ;;  %v800_v9 = vmul.f32 %v2934_v39, %v734_v60  ;;  %v842_v26 = vadd.f32 %v794_v13, %v633_v10  ;;  %v845_v62 = vadd.f32 %v797_v15, %v636_v52  ;;  %v3209_v52 = vld [vmem:[%s2872_s28 + $0x40] sm:$0xff]  ;;  %v3212_v13 = vld [vmem:[%s2872_s28 + $0x108] sm:$0xff] }
  0xac   : > { %4848 = vst [vmem:[#allocation25_spill] sm:$0xff] %v3184_v21  ;;  %v3192_v14 = vmul.f32 %v2908_v25, %v3140_v41  ;;  %v3198_v50 = vsel %vm711_vm1, %v4786_v5, %v687_v58  ;;  %v3204_v3 = vsel %vm711_vm1, %v4788_v11, %v684_v43  ;;  %v994_v10 = vmul.f32 %v3011_v19, %v3113_v46 }
  0xad   : > { %4849 = vst [vmem:[#allocation26_spill] sm:$0xff] %v3198_v50  ;;  %4850 = vst [vmem:[#allocation27_spill] sm:$0xff] %v3204_v3  ;;  %v942_v15 = vadd.f32 %v894_v47, %v842_v26  ;;  %v945_v7 = vadd.f32 %v897_v4, %v845_v62  ;;  %v997_v44 = vmul.f32 %v3011_v19, %v525_v55  ;;  %v4794_v11 = vrot.slane %v3188_v17, 1 }
  0xae   : > { %v1094_v58 = vmul.f32 %v3016_v28, %v3154_v59  ;;  %v848_v5 = vadd.f32 %v800_v9, %v639_v38  ;;  %v900_v63 = vmul.f32 %v2966_v53, %v3212_v13  ;;  %v1097_v43 = vmul.f32 %v3016_v28, %v734_v60 }
  0xaf   : > { %v1042_v49 = vadd.f32 %v994_v10, %v942_v15  ;;  %v1194_v16 = vmul.f32 %v3027_v45, %v3074_v0  ;;  %v351_v4 = vmul.f32 %v2905_v24, %v2902_v23  ;;  %v4792_v47 = vrot.slane %v3209_v52, 1 }
  0xb0   : > { %v1294_v26 = vmul.f32 %v3032_v20, %v525_v55  ;;  %v554_v9 = vsel %vm502_vm0, %v447_v34, %v448_v12  ;;  %v4793_v38 = vrot.slane %v3188_v17, 2  ;;  %v4797_v62 = vrot.slane %v3209_v52, 2 }
  0xb1   : > { %v1045_v10 = vadd.f32 %v997_v44, %v945_v7  ;;  %v1142_v0 = vadd.f32 %v1094_v58, %v1042_v49  ;;  %v548_v55 = vsel %vm502_vm0, %v453_v42, %v4792_v47  ;;  %v562_v15 = vmul.f32 %v2908_v25, %v554_v9 }
  0xb2   : > { %v1394_v57 = vmul.f32 %v3045_v18, %v734_v60  ;;  %v357_v34 = vmul.f32 %v2905_v24, %v2926_v35  ;;  %v551_v49 = vsel %vm502_vm0, %v450_v40, %v4794_v11  ;;  %v568_v12 = vmul.f32 %v2908_v25, %v548_v55 }
  0xb3   : > { %v1242_v44 = vadd.f32 %v1194_v16, %v1142_v0  ;;  %v610_v7 = vadd.f32 %v562_v15, %v351_v4  ;;  %v4851_v42 = vrot.slane %v2918_v31, 2  ;;  %v4852_v58 = vrot.slane %v2975_v61, 2 }
  0xb4   : > { %v4853_v9 = vrot.slane %v2902_v23, 2  ;;  %v3266_v40 = vmul.f32 %v2934_v39, %v3198_v50  ;;  %v4855_v16 = vrot.slane %v2926_v35, 2  ;;  %v871_v15 = vmul.f32 %v2966_v53, %v2918_v31 }
  0xb5   : > { %v760_v60 = vsel %vm711_vm1, %v4851_v42, %v4793_v38  ;;  %v3277_v23 = vadd.f32 %v900_v63, %v848_v5  ;;  %v3279_v42 = vadd.f32 %v1097_v43, %v1045_v10  ;;  %v3285_v38 = vld [vmem:[%s2872_s28 + $0x100] sm:$0xff]  ;;  %v616_v11 = vadd.f32 %v568_v12, %v357_v34 }
  0xb6   : > { %v763_v47 = vsel %vm711_vm1, %v4853_v9, %v4852_v58  ;;  %4854 = vst [vmem:[#allocation28_spill] sm:$0xff] %v3266_v40  ;;  %v757_v4 = vsel %vm711_vm1, %v4855_v16, %v4797_v62  ;;  %v1342_v58 = vadd.f32 %v1294_v26, %v1242_v44  ;;  %v3282_v9 = vmul.f32 %v2908_v25, %v551_v49 }
  0xb7   : > { %v771_v0 = vmul.f32 %v2934_v39, %v763_v47  ;;  %4856 = vst [vmem:[#allocation29_spill] sm:$0xff] %v3277_v23  ;;  %v3288_v22 = vmul.f32 %v2934_v39, %v760_v60  ;;  %v971_v47 = vmul.f32 %v3011_v19, %v551_v49  ;;  %v777_v59 = vmul.f32 %v2934_v39, %v757_v4 }
  0xb8   : > { %v1442_v62 = vadd.f32 %v1394_v57, %v1342_v58  ;;  %v3293_v63 = vmul.f32 %v3011_v19, %v548_v55  ;;  %v1071_v5 = vmul.f32 %v3016_v28, %v760_v60  ;;  %v1171_v26 = vmul.f32 %v3027_v45, %v2926_v35 }
  0xb9   : > { %v819_v16 = vadd.f32 %v771_v0, %v610_v7  ;;  %v375_v10 = vmul.f32 %v2905_v24, %v3022_v37  ;;  %v4799_v34 = vrot.slane %v3285_v38, 1  ;;  %v1271_v49 = vmul.f32 %v3032_v20, %v548_v55 }
  0xba   : > { %2218 = vmatprep.mubr.f32.mxu1 %v1442_v62  ;;  %v4857_v57 = vrot.slane %v3086_v8, 1  ;;  %v4858_v12 = vrot.slane %v3056_v51, 1  ;;  %v4860_v7 = vrot.slane %v3118_v54, 1  ;;  %v4861_v60 = vrot.slane %v3022_v37, 1 }
  0xbb   : > { %v919_v43 = vadd.f32 %v871_v15, %v819_v16  ;;  %v4863_v55 = vrot.slane %v3077_v2, 1  ;;  %v895_v56 = vmul.f32 %v2966_v53, %v3056_v51  ;;  %v3356_v6 = vadd.f32 %v777_v59, %v616_v11 }
  0xbc   : > { %v3308_v44 = vsel %vm502_vm0, %v4858_v12, %v4857_v57  ;;  %v3316_v0 = vsel %vm502_vm0, %v4861_v60, %v4860_v7  ;;  %v4864_v57 = vrot.slane %v3118_v54, 2  ;;  %v4865_v12 = vrot.slane %v3022_v37, 2 }
  0xbd   : > { %4859 = vst [vmem:[#allocation30_spill] sm:$0xff] %v3308_v44  ;;  %4862 = vst [vmem:[#allocation31_spill] sm:$0xff] %v3316_v0  ;;  %v1019_v15 = vadd.f32 %v971_v47, %v919_v43  ;;  %v524_v58 = vsel %vm502_vm0, %v4863_v55, %v4799_v34  ;;  %v586_v16 = vmul.f32 %v2908_v25, %v3316_v0  ;;  %v4867_v60 = vrot.slane %v3086_v8, 2 }
  0xbe   : > { %v3333_v7 = vsel %vm711_vm1, %v4865_v12, %v4864_v57  ;;  %v381_v47 = vmul.f32 %v2905_v24, %v3077_v2  ;;  %v592_v43 = vmul.f32 %v2908_v25, %v524_v58  ;;  %v4868_v55 = vrot.slane %v3056_v51, 2  ;;  %4872 = vst [vmem:[#allocation34_spill] sm:$0xff] %v3356_v6 }
  0xbf   : > { %4866 = vst [vmem:[#allocation32_spill] sm:$0xff] %v3333_v7  ;;  %v795_v37 = vmul.f32 %v2934_v39, %v3333_v7  ;;  %v1119_v62 = vadd.f32 %v1071_v5, %v1019_v15  ;;  %v634_v46 = vadd.f32 %v586_v16, %v375_v10  ;;  %v4870_v57 = vrot.slane %v3285_v38, 2 }
  0xc0   : > { %v3344_v34 = vsel %vm711_vm1, %v4868_v55, %v4867_v60  ;;  %v4871_v12 = vrot.slane %v3077_v2, 2  ;;  %v3359_v60 = vmul.f32 %v3016_v28, %v757_v4  ;;  %v1371_v55 = vmul.f32 %v3045_v18, %v757_v4 }
  0xc1   : > { %4869 = vst [vmem:[#allocation33_spill] sm:$0xff] %v3344_v34  ;;  %v3364_v5 = vmul.f32 %v2908_v25, %v3308_v44  ;;  %v1219_v10 = vadd.f32 %v1171_v26, %v1119_v62  ;;  %v3368_v15 = vmul.f32 %v2934_v39, %v3344_v34  ;;  %v843_v16 = vadd.f32 %v795_v37, %v634_v46 }
  0xc2   : > { %v733_v0 = vsel %vm711_vm1, %v4871_v12, %v4870_v57  ;;  %v995_v57 = vmul.f32 %v3011_v19, %v3308_v44  ;;  %v640_v59 = vadd.f32 %v592_v43, %v381_v47  ;;  %v3374_v12 = vmul.f32 %v3011_v19, %v524_v58 }
  0xc3   : > { %v801_v11 = vmul.f32 %v2934_v39, %v733_v0  ;;  %v352_v4 = vmul.f32 %v2905_v24, %v2975_v61  ;;  %v1319_v7 = vadd.f32 %v1271_v49, %v1219_v10  ;;  %v943_v36 = vadd.f32 %v895_v56, %v843_v16 }
  0xc4   : > { %v1095_v26 = vmul.f32 %v3016_v28, %v3344_v34  ;;  %v4813_v62 = vrot.slane %v3063_v29, 1  ;;  %v1195_v46 = vmul.f32 %v3027_v45, %v3077_v2  ;;  %v358_v47 = vmul.f32 %v2905_v24, %v3209_v52 }
  0xc5   : > { %v563_v43 = vmul.f32 %v2908_v25, %v3053_v27  ;;  %v4814_v37 = vrot.slane %v3063_v29, 2  ;;  %v1419_v44 = vadd.f32 %v1371_v55, %v1319_v7  ;;  %v1043_v61 = vadd.f32 %v995_v57, %v943_v36 }
  0xc6   : > { %v4873_v56 = vrot.slane %v3209_v52, 1  ;;  %v4874_v10 = vrot.slane %v2921_v32, 1  ;;  %v4875_v16 = vrot.slane %v3188_v17, 1  ;;  %v4876_v7 = vrot.slane %v2921_v32, 2 }
  0xc7   : > { %v611_v6 = vadd.f32 %v563_v43, %v352_v4  ;;  %v4877_v36 = vrot.slane %v3188_v17, 2  ;;  %v772_v57 = vmul.f32 %v2934_v39, %v3069_v30  ;;  %2183 = vmatmul.mubr.f32.vlgmr.msra.gmra.mrb[0].mxu0 %v1419_v44  ;;  %v872_v32 = vmul.f32 %v2966_v53, %v3188_v17 }
  0xc8   : > { %v547_v49 = vsel %vm502_vm0, %v4873_v56, %v4813_v62  ;;  %v550_v34 = vsel %vm502_vm0, %v4875_v16, %v4874_v10  ;;  %v1143_v56 = vadd.f32 %v1095_v26, %v1043_v61  ;;  %v1295_v62 = vmul.f32 %v3032_v20, %v524_v58 }
  0xc9   : > { %v569_v27 = vmul.f32 %v2908_v25, %v547_v49  ;;  %v759_v55 = vsel %vm711_vm1, %v4877_v36, %v4876_v7  ;;  %v4878_v10 = vrot.slane %v3209_v52, 2  ;;  %v3418_v43 = vadd.f32 %v801_v11, %v640_v59 }
  0xca   : > { %v3421_v16 = vmul.f32 %v3016_v28, %v733_v0  ;;  %v820_v30 = vadd.f32 %v772_v57, %v611_v6  ;;  %v972_v44 = vmul.f32 %v3011_v19, %v550_v34  ;;  %v1243_v26 = vadd.f32 %v1195_v46, %v1143_v56 }
  0xcb   : > { %v756_v4 = vsel %vm711_vm1, %v4878_v10, %v4814_v37  ;;  %4879 = vst [vmem:[#allocation35_spill] sm:$0xff] %v3418_v43  ;;  %v1395_v58 = vmul.f32 %v3045_v18, %v733_v0  ;;  %v3426_v61 = vmul.f32 %v2908_v25, %v550_v34  ;;  %v3429_v7 = vmul.f32 %v2934_v39, %v759_v55 }
  0xcc   : > { %v617_v36 = vadd.f32 %v569_v27, %v358_v47  ;;  %v778_v10 = vmul.f32 %v2934_v39, %v756_v4  ;;  %v920_v59 = vadd.f32 %v872_v32, %v820_v30  ;;  %v1072_v11 = vmul.f32 %v3016_v28, %v759_v55 }
  0xcd   : > { %v1343_v37 = vadd.f32 %v1295_v62, %v1243_v26  ;;  %v1172_v6 = vmul.f32 %v3027_v45, %v3209_v52  ;;  %v376_v0 = vmul.f32 %v2905_v24, %v3118_v54  ;;  %v479_v34 = vrot.slane %v3212_v13, 1 }
  0xce   : > { %v1020_v46 = vadd.f32 %v972_v44, %v920_v59  ;;  %v587_v57 = vmul.f32 %v2908_v25, %v3184_v21  ;;  %v690_v47 = vrot.slane %v3212_v13, 2  ;;  %v796_v27 = vmul.f32 %v2934_v39, %v3204_v3  ;;  %v3472_v21 = vld [vmem:[%s2872_s28 + $0x110] sm:$0xff] }
  0xcf   : > { %v1443_v55 = vadd.f32 %v1395_v58, %v1343_v37  ;;  %v3444_v62 = vmul.f32 %v3011_v19, %v547_v49  ;;  %v1272_v56 = vmul.f32 %v3032_v20, %v547_v49  ;;  %v4880_v32 = vrot.slane %v3285_v38, 1  ;;  %v3458_v58 = vld [vmem:[%s2872_s28 + $0x50] sm:$0xff] }
  0xd0   : > { %v1120_v30 = vadd.f32 %v1072_v11, %v1020_v46  ;;  %v635_v44 = vadd.f32 %v587_v57, %v376_v0  ;;  %v4881_v26 = vrot.slane %v3285_v38, 2  ;;  %v896_v37 = vmul.f32 %v2966_v53, %v3086_v8 }
  0xd1   : > { %v523_v54 = vsel %vm502_vm0, %v4880_v32, %v479_v34  ;;  %2219 = vmatmul.mubr.f32.vlgmr.msra.gmra.mrb[0].mxu1 %v1443_v55  ;;  %v3460_v49 = vadd.f32 %v778_v10, %v617_v36  ;;  %v3463_v3 = vmul.f32 %v3016_v28, %v756_v4  ;;  %v382_v11 = vmul.f32 %v2905_v24, %v3285_v38 }
  0xd2   : > { %v732_v59 = vsel %vm711_vm1, %v4881_v26, %v690_v47  ;;  %v593_v0 = vmul.f32 %v2908_v25, %v523_v54  ;;  %v1220_v46 = vadd.f32 %v1172_v6, %v1120_v30  ;;  %v1372_v57 = vmul.f32 %v3045_v18, %v756_v4 }
  0xd3   : > { %4882 = vst [vmem:[#allocation36_spill] sm:$0xff] %v3460_v49  ;;  %v844_v32 = vadd.f32 %v796_v27, %v635_v44  ;;  %v996_v26 = vmul.f32 %v3011_v19, %v3140_v41  ;;  %v802_v36 = vmul.f32 %v2934_v39, %v732_v59  ;;  %v3476_v10 = vmul.f32 %v3011_v19, %v523_v54 }
  0xd4   : > { %v1096_v55 = vmul.f32 %v3016_v28, %v3198_v50  ;;  %v456_v49 = vrot.slane %v3458_v58, 1  ;;  %v1320_v43 = vadd.f32 %v1272_v56, %v1220_v46  ;;  %v3482_v4 = vmul.f32 %v3016_v28, %v732_v59 }
  0xd5   : > { %4883 = vst [vmem:[#allocation37_spill] sm:$0xff] %v3476_v10  ;;  %v944_v6 = vadd.f32 %v896_v37, %v844_v32  ;;  %v4821_v27 = vrot.slane %v3458_v58, 2  ;;  %v641_v30 = vadd.f32 %v593_v0, %v382_v11  ;;  %v4885_v44 = vrot.slane %v3063_v29, 1 }
  0xd6   : > { %4884 = vst [vmem:[#allocation38_spill] sm:$0xff] %v3482_v4  ;;  %v1173_v23 = vmul.f32 %v3027_v45, %v3063_v29  ;;  %v4822_v50 = vrot.slane %v3472_v21, 1  ;;  %v1420_v10 = vadd.f32 %v1372_v57, %v1320_v43  ;;  %v1196_v56 = vmul.f32 %v3027_v45, %v3285_v38 }
  0xd7   : > { %v546_v41 = vsel %vm502_vm0, %v4885_v44, %v456_v49  ;;  %v1044_v48 = vadd.f32 %v996_v26, %v944_v6  ;;  %v4886_v37 = vrot.slane %v3063_v29, 2  ;;  %v1296_v0 = vmul.f32 %v3032_v20, %v523_v54 }
  0xd8   : > { %v1396_v46 = vmul.f32 %v3045_v18, %v732_v59  ;;  %v359_v32 = vmul.f32 %v2905_v24, %v3063_v29  ;;  %v1221_v43 = vadd.f32 %v1173_v23, %v3130_v33  ;;  %2185 = vmatprep.mubr.f32.mxu0 %v1420_v10  ;;  %v570_v26 = vmul.f32 %v2908_v25, %v546_v41 }
  0xd9   : > { %v755_v11 = vsel %vm711_vm1, %v4886_v37, %v4821_v27  ;;  %v1144_v57 = vadd.f32 %v1096_v55, %v1044_v48  ;;  %v1273_v6 = vmul.f32 %v3032_v20, %v546_v41  ;;  %v383_v37 = vmul.f32 %v2905_v24, %v3212_v13 }
  0xda   : > { %v1373_v44 = vmul.f32 %v3045_v18, %v755_v11  ;;  %v522_v54 = vsel %vm502_vm0, %v479_v34, %v4822_v50  ;;  %v691_v29 = vrot.slane %v3472_v21, 2  ;;  %v1197_v33 = vmul.f32 %v3027_v45, %v3212_v13  ;;  %v3527_v50 = vld [vmem:[%s2872_s28 + $0x58] sm:$0xff] }
  0xdb   : > { %v1244_v48 = vadd.f32 %v1196_v56, %v1144_v57  ;;  %v1321_v23 = vadd.f32 %v1273_v6, %v1221_v43  ;;  %v594_v59 = vmul.f32 %v2908_v25, %v522_v54  ;;  %v354_v10 = vmul.f32 %v2905_v24, %v2918_v31 }
  0xdc   : > { %v3520_v55 = vadd.f32 %v802_v36, %v641_v30  ;;  %v731_v27 = vsel %vm711_vm1, %v690_v47, %v691_v29  ;;  %v1245_v4 = vadd.f32 %v1197_v33, %v3279_v42  ;;  %v1297_v34 = vmul.f32 %v3032_v20, %v522_v54 }
  0xdd   : > { %v1344_v40 = vadd.f32 %v1296_v0, %v1244_v48  ;;  %v618_v13 = vadd.f32 %v570_v26, %v359_v32  ;;  %v779_v56 = vmul.f32 %v2934_v39, %v755_v11  ;;  %v1421_v43 = vadd.f32 %v1373_v44, %v1321_v23 }
  0xde   : > { %v642_v57 = vadd.f32 %v594_v59, %v383_v37  ;;  %v803_v6 = vmul.f32 %v2934_v39, %v731_v27  ;;  %v1345_v31 = vadd.f32 %v1297_v34, %v1245_v4  ;;  %v1397_v36 = vmul.f32 %v3045_v18, %v731_v27 }
  0xdf   : > { %v1444_v30 = vadd.f32 %v1396_v46, %v1344_v40  ;;  %v3533_v47 = vmul.f32 %v3011_v19, %v546_v41  ;;  %2186 = vmatmul.mubr.f32.gmra.mrb[2].mxu0 %v1421_v43  ;;  %v457_v42 = vrot.slane %v3527_v50, 1  ;;  %v613_v0 = vadd.f32 %v3282_v9, %v354_v10  ;;  %v3549_v46 = vld [vmem:[%s2872_s28 + $0x118] sm:$0xff] }
  0xe0   : > { %v3538_v32 = vmul.f32 %v3016_v28, %v755_v11  ;;  %v1445_v26 = vadd.f32 %v1397_v36, %v1345_v31  ;;  %v668_v44 = vrot.slane %v3527_v50, 2  ;;  %v874_v4 = vmul.f32 %v2966_v53, %v2926_v35 }
  0xe1   : > { %2221 = vmatprep.mubr.f32.mxu1 %v1444_v30  ;;  %v3543_v37 = vadd.f32 %v779_v56, %v618_v13  ;;  %v545_v41 = vsel %vm502_vm0, %v456_v49, %v457_v42  ;;  %v822_v40 = vadd.f32 %v3288_v22, %v613_v0  ;;  %v378_v9 = vmul.f32 %v2905_v24, %v3056_v51  ;;  %v3590_v30 = vld [vmem:[%s2872_s28 + $0x60] sm:$0xff] }
  0xe2   : > { %v3553_v11 = vadd.f32 %v803_v6, %v642_v57  ;;  %v3556_v33 = vmul.f32 %v3011_v19, %v522_v54  ;;  %v3559_v35 = vmul.f32 %v3016_v28, %v731_v27  ;;  %2222 = vmatmul.mubr.f32.gmra.mrb[2].mxu1 %v1445_v26  ;;  %v360_v48 = vmul.f32 %v2905_v24, %v3458_v58 }
  0xe3   : > { %v571_v22 = vmul.f32 %v2908_v25, %v545_v41  ;;  %v922_v49 = vadd.f32 %v874_v4, %v822_v40  ;;  %v1174_v23 = vmul.f32 %v3027_v45, %v3458_v58  ;;  %v384_v51 = vmul.f32 %v2905_v24, %v3472_v21 }
  0xe4   : > { %v4887_v54 = vrot.slane %v3458_v58, 2  ;;  %v481_v59 = vrot.slane %v3549_v46, 1  ;;  %v637_v10 = vadd.f32 %v3364_v5, %v378_v9  ;;  %v692_v34 = vrot.slane %v3549_v46, 2 }
  0xe5   : > { %v3576_v13 = vmul.f32 %v3011_v19, %v545_v41  ;;  %v1022_v56 = vadd.f32 %v3293_v63, %v922_v49  ;;  %v1274_v43 = vmul.f32 %v3032_v20, %v545_v41  ;;  %v898_v57 = vmul.f32 %v2966_v53, %v3077_v2 }
  0xe6   : > { %v754_v27 = vsel %vm711_vm1, %v4887_v54, %v668_v44  ;;  %v4888_v6 = vrot.slane %v3472_v21, 1  ;;  %v730_v5 = vsel %vm711_vm1, %v691_v29, %v692_v34  ;;  %v846_v36 = vadd.f32 %v3368_v15, %v637_v10 }
  0xe7   : > { %v355_v63 = vmul.f32 %v2905_v24, %v3188_v17  ;;  %v780_v0 = vmul.f32 %v2934_v39, %v754_v27  ;;  %v3596_v26 = vmul.f32 %v3016_v28, %v754_v27  ;;  %v1122_v2 = vadd.f32 %v3359_v60, %v1022_v56 }
  0xe8   : > { %v521_v31 = vsel %vm502_vm0, %v4888_v6, %v481_v59  ;;  %v619_v41 = vadd.f32 %v571_v22, %v360_v48  ;;  %v1374_v40 = vmul.f32 %v3045_v18, %v754_v27  ;;  %v946_v29 = vadd.f32 %v898_v57, %v846_v36 }
  0xe9   : > { %v595_v4 = vmul.f32 %v2908_v25, %v521_v31  ;;  %v1198_v15 = vmul.f32 %v3027_v45, %v3472_v21  ;;  %v1222_v9 = vadd.f32 %v1174_v23, %v1122_v2  ;;  %v804_v17 = vmul.f32 %v2934_v39, %v730_v5 }
  0xea   : > { %v458_v54 = vrot.slane %v3590_v30, 1  ;;  %v1046_v10 = vadd.f32 %v3374_v12, %v946_v29  ;;  %v614_v60 = vadd.f32 %v3426_v61, %v355_v63  ;;  %v669_v56 = vrot.slane %v3590_v30, 2 }
  0xeb   : > { %v643_v49 = vadd.f32 %v595_v4, %v384_v51  ;;  %v875_v48 = vmul.f32 %v2966_v53, %v3209_v52  ;;  %v1322_v22 = vadd.f32 %v1274_v43, %v1222_v9  ;;  %v1298_v27 = vmul.f32 %v3032_v20, %v521_v31  ;;  %v3623_v43 = vld [vmem:[%s2872_s28 + $0x120] sm:$0xff] }
  0xec   : > { %v361_v23 = vmul.f32 %v2905_v24, %v3527_v50  ;;  %v544_v51 = vsel %vm502_vm0, %v457_v42, %v458_v54  ;;  %v1146_v57 = vadd.f32 %v3421_v16, %v1046_v10  ;;  %v753_v61 = vsel %vm711_vm1, %v668_v44, %v669_v56 }
  0xed   : > { %v572_v12 = vmul.f32 %v2908_v25, %v544_v51  ;;  %v823_v52 = vadd.f32 %v3429_v7, %v614_v60  ;;  %v3625_v6 = vadd.f32 %v780_v0, %v619_v41  ;;  %v1422_v36 = vadd.f32 %v1374_v40, %v1322_v22  ;;  %v3657_v22 = vld [vmem:[%s2872_s28 + $0x68] sm:$0xff] }
  0xee   : > { %v3628_v63 = vmul.f32 %v3011_v19, %v521_v31  ;;  %v3631_v42 = vmul.f32 %v3016_v28, %v730_v5  ;;  %v3633_v16 = vadd.f32 %v804_v17, %v643_v49  ;;  %v1246_v2 = vadd.f32 %v1198_v15, %v1146_v57 }
  0xef   : > { %4889 = vst [vmem:[#allocation39_spill] sm:$0xff] %v3625_v6  ;;  %v1398_v4 = vmul.f32 %v3045_v18, %v730_v5  ;;  %v923_v29 = vadd.f32 %v875_v48, %v823_v52  ;;  %2188 = vmatprep.mubr.f32.mxu0 %v1422_v36  ;;  %v781_v7 = vmul.f32 %v2934_v39, %v753_v61  ;;  %v482_v0 = vrot.slane %v3623_v43, 1 }
  0xf0   : > { %4890 = vst [vmem:[#allocation40_spill] sm:$0xff] %v3633_v16  ;;  %v1175_v44 = vmul.f32 %v3027_v45, %v3527_v50  ;;  %v379_v31 = vmul.f32 %v2905_v24, %v3086_v8  ;;  %v1346_v41 = vadd.f32 %v1298_v27, %v1246_v2  ;;  %v620_v40 = vadd.f32 %v572_v12, %v361_v23  ;;  %v4891_v23 = vld [vmem:[#allocation28_spill] sm:$0xff] }
  0xf1   : > { %v1023_v9 = vadd.f32 %v3444_v62, %v923_v29  ;;  %v693_v15 = vrot.slane %v3623_v43, 2  ;;  %v3645_v5 = vmul.f32 %v3011_v19, %v544_v51  ;;  %v520_v49 = vsel %vm502_vm0, %v481_v59, %v482_v0 }
  0xf2   : > { %v638_v17 = vadd.f32 %v3192_v14, %v379_v31  ;;  %v899_v10 = vmul.f32 %v2966_v53, %v3285_v38  ;;  %v1446_v8 = vadd.f32 %v1398_v4, %v1346_v41  ;;  %v1275_v48 = vmul.f32 %v3032_v20, %v544_v51  ;;  %v4894_v41 = vld [vmem:[#allocation37_spill] sm:$0xff] }
  0xf3   : > { %v1123_v60 = vadd.f32 %v3463_v3, %v1023_v9  ;;  %v729_v62 = vsel %vm711_vm1, %v692_v34, %v693_v15  ;;  %v3660_v27 = vmul.f32 %v3016_v28, %v753_v61  ;;  %v385_v59 = vmul.f32 %v2905_v24, %v3549_v46 }
  0xf4   : > { %v596_v14 = vmul.f32 %v2908_v25, %v520_v49  ;;  %v847_v38 = vadd.f32 %v4891_v23, %v638_v17  ;;  %2224 = vmatprep.mubr.f32.mxu1 %v1446_v8  ;;  %v3666_v57 = vadd.f32 %v781_v7, %v620_v40  ;;  %v1375_v51 = vmul.f32 %v3045_v18, %v753_v61 }
  0xf5   : > { %v1223_v3 = vadd.f32 %v1175_v44, %v1123_v60  ;;  %v1199_v34 = vmul.f32 %v3027_v45, %v3549_v46  ;;  %v805_v12 = vmul.f32 %v2934_v39, %v729_v62  ;;  %v459_v36 = vrot.slane %v3657_v22, 1  ;;  %v4893_v44 = vld [vmem:[#allocation21_spill] sm:$0xff] }
  0xf6   : > { %4892 = vst [vmem:[#allocation28_spill] sm:$0xff] %v3666_v57  ;;  %v947_v52 = vadd.f32 %v899_v10, %v847_v38  ;;  %v4823_v2 = vrot.slane %v3657_v22, 2  ;;  %v3675_v29 = vmul.f32 %v3011_v19, %v520_v49  ;;  %v3678_v7 = vmul.f32 %v3016_v28, %v729_v62  ;;  %v3688_v10 = vld [vmem:[%s2872_s28 + $0x128] sm:$0xff]  ;;  %v3728_v57 = vld [vmem:[%s2872_s28 + $0x130] sm:$0xff] }
  0xf7   : > { %v1323_v4 = vadd.f32 %v1275_v48, %v1223_v3  ;;  %v1024_v61 = vadd.f32 %v3533_v47, %v4893_v44  ;;  %v644_v31 = vadd.f32 %v596_v14, %v385_v59  ;;  %v543_v9 = vsel %vm502_vm0, %v458_v54, %v459_v36  ;;  %v4895_v59 = vld [vmem:[#allocation38_spill] sm:$0xff] }
  0xf8   : > { %v1047_v40 = vadd.f32 %v4894_v41, %v947_v52  ;;  %v1176_v17 = vmul.f32 %v3027_v45, %v3590_v30  ;;  %v1299_v60 = vmul.f32 %v3032_v20, %v520_v49  ;;  %v362_v48 = vmul.f32 %v2905_v24, %v3590_v30  ;;  %v4896_v41 = vld [vmem:[#allocation29_spill] sm:$0xff] }
  0xf9   : > { %v1423_v8 = vadd.f32 %v1375_v51, %v1323_v4  ;;  %v752_v47 = vsel %vm711_vm1, %v669_v56, %v4823_v2  ;;  %v573_v14 = vmul.f32 %v2908_v25, %v543_v9  ;;  %v1124_v23 = vadd.f32 %v3538_v32, %v1024_v61 }
  0xfa   : > { %v1147_v54 = vadd.f32 %v4895_v59, %v1047_v40  ;;  %v1276_v38 = vmul.f32 %v3032_v20, %v543_v9  ;;  %v1399_v49 = vmul.f32 %v3045_v18, %v729_v62  ;;  %v386_v3 = vmul.f32 %v2905_v24, %v3623_v43 }
  0xfb   : > { %2189 = vmatmul.mubr.f32.gmra.mrb[4].mxu0 %v1423_v8  ;;  %v483_v51 = vrot.slane %v3688_v10, 1  ;;  %v694_v52 = vrot.slane %v3688_v10, 2  ;;  %v1224_v4 = vadd.f32 %v1176_v17, %v1124_v23  ;;  %v1376_v44 = vmul.f32 %v3045_v18, %v752_v47  ;;  %v3720_v23 = vld [vmem:[%s2872_s28 + $0x70] sm:$0xff] }
  0xfc   : > { %v1247_v56 = vadd.f32 %v1199_v34, %v1147_v54  ;;  %v1048_v32 = vadd.f32 %v3556_v33, %v4896_v41  ;;  %v782_v61 = vmul.f32 %v2934_v39, %v752_v47  ;;  %v1200_v8 = vmul.f32 %v3027_v45, %v3623_v43 }
  0xfd   : > { %v519_v62 = vsel %vm502_vm0, %v482_v0, %v483_v51  ;;  %v728_v40 = vsel %vm711_vm1, %v693_v15, %v694_v52  ;;  %v621_v34 = vadd.f32 %v573_v14, %v362_v48  ;;  %v1324_v17 = vadd.f32 %v1276_v38, %v1224_v4 }
  0xfe   : > { %v1347_v59 = vadd.f32 %v1299_v60, %v1247_v56  ;;  %v597_v54 = vmul.f32 %v2908_v25, %v519_v62  ;;  %v3722_v2 = vadd.f32 %v805_v12, %v644_v31  ;;  %v806_v33 = vmul.f32 %v2934_v39, %v728_v40 }
  0xff   : > { %v1148_v41 = vadd.f32 %v3559_v35, %v1048_v32  ;;  %v1300_v0 = vmul.f32 %v3032_v20, %v519_v62  ;;  %v1424_v16 = vadd.f32 %v1376_v44, %v1324_v17  ;;  %v1400_v60 = vmul.f32 %v3045_v18, %v728_v40 }
 0x100   : > { %v1447_v15 = vadd.f32 %v1399_v49, %v1347_v59  ;;  %v645_v6 = vadd.f32 %v597_v54, %v386_v3  ;;  %v460_v14 = vrot.slane %v3720_v23, 1  ;;  %v671_v38 = vrot.slane %v3720_v23, 2 }
 0x101   : > { %v1248_v48 = vadd.f32 %v1200_v8, %v1148_v41  ;;  %v877_v12 = vmul.f32 %v2966_v53, %v3458_v58  ;;  %v3735_v31 = vadd.f32 %v782_v61, %v621_v34  ;;  %v3738_v35 = vmul.f32 %v3011_v19, %v543_v9  ;;  %2191 = vmatprep.mubr.f32.mxu0 %v1424_v16  ;;  %v4897_v58 = vld [vmem:[#allocation34_spill] sm:$0xff] }
 0x102   : > { %2225 = vmatmul.mubr.f32.gmra.mrb[4].mxu1 %v1447_v15  ;;  %v3741_v49 = vmul.f32 %v3016_v28, %v752_v47  ;;  %v4824_v3 = vrot.slane %v3728_v57, 1  ;;  %v363_v4 = vmul.f32 %v2905_v24, %v3657_v22  ;;  %v542_v44 = vsel %vm502_vm0, %v459_v36, %v460_v14  ;;  %v3781_v15 = vld [vmem:[%s2872_s28 + $0x78] sm:$0xff] }
 0x103   : > { %v1348_v56 = vadd.f32 %v1300_v0, %v1248_v48  ;;  %v925_v32 = vadd.f32 %v877_v12, %v4897_v58  ;;  %v3749_v61 = vadd.f32 %v806_v33, %v645_v6  ;;  %v3752_v9 = vmul.f32 %v3011_v19, %v519_v62 }
 0x104   : > { %v3755_v47 = vmul.f32 %v3016_v28, %v728_v40  ;;  %v4899_v16 = vrot.slane %v3657_v22, 2  ;;  %v574_v34 = vmul.f32 %v2908_v25, %v542_v44  ;;  %v1177_v6 = vmul.f32 %v3027_v45, %v3657_v22 }
 0x105   : > { %4898 = vst [vmem:[#allocation21_spill] sm:$0xff] %v3749_v61  ;;  %v1448_v59 = vadd.f32 %v1400_v60, %v1348_v56  ;;  %v1025_v36 = vadd.f32 %v3576_v13, %v925_v32  ;;  %v387_v62 = vmul.f32 %v2905_v24, %v3688_v10  ;;  %v518_v40 = vsel %vm502_vm0, %v483_v51, %v4824_v3  ;;  %v3813_v3 = vld [vmem:[%s2872_s28 + $0x138] sm:$0xff] }
 0x106   : > { %v751_v8 = vsel %vm711_vm1, %v4899_v16, %v671_v38  ;;  %v695_v17 = vrot.slane %v3728_v57, 2  ;;  %v901_v54 = vmul.f32 %v2966_v53, %v3472_v21  ;;  %v3776_v13 = vmul.f32 %v3011_v19, %v542_v44  ;;  %v4900_v21 = vld [vmem:[#allocation35_spill] sm:$0xff] }
 0x107   : > { %2227 = vmatprep.mubr.f32.mxu1 %v1448_v59  ;;  %v783_v33 = vmul.f32 %v2934_v39, %v751_v8  ;;  %v1125_v41 = vadd.f32 %v3596_v26, %v1025_v36  ;;  %v1277_v0 = vmul.f32 %v3032_v20, %v542_v44  ;;  %v3784_v60 = vmul.f32 %v3016_v28, %v751_v8 }
 0x108   : > { %v1377_v51 = vmul.f32 %v3045_v18, %v751_v8  ;;  %v598_v48 = vmul.f32 %v2908_v25, %v518_v40  ;;  %v949_v12 = vadd.f32 %v901_v54, %v4900_v21  ;;  %v622_v56 = vadd.f32 %v574_v34, %v363_v4 }
 0x109   : > { %v1225_v58 = vadd.f32 %v1177_v6, %v1125_v41  ;;  %v727_v32 = vsel %vm711_vm1, %v694_v52, %v695_v17  ;;  %v3792_v26 = vmul.f32 %v3011_v19, %v518_v40  ;;  %v1201_v16 = vmul.f32 %v3027_v45, %v3688_v10 }
 0x10a   : > { %v1049_v44 = vadd.f32 %v3628_v63, %v949_v12  ;;  %v1301_v8 = vmul.f32 %v3032_v20, %v518_v40  ;;  %v461_v59 = vrot.slane %v3781_v15, 1  ;;  %v364_v4 = vmul.f32 %v2905_v24, %v3720_v23  ;;  %v4901_v12 = vld [vmem:[#allocation36_spill] sm:$0xff] }
 0x10b   : > { %v1325_v36 = vadd.f32 %v1277_v0, %v1225_v58  ;;  %v672_v34 = vrot.slane %v3781_v15, 2  ;;  %v878_v52 = vmul.f32 %v2966_v53, %v3527_v50  ;;  %v646_v6 = vadd.f32 %v598_v48, %v387_v62 }
 0x10c   : > { %v807_v63 = vmul.f32 %v2934_v39, %v727_v32  ;;  %v1149_v54 = vadd.f32 %v3631_v42, %v1049_v44  ;;  %v541_v41 = vsel %vm502_vm0, %v460_v14, %v461_v59  ;;  %v3815_v61 = vadd.f32 %v783_v33, %v622_v56 }
 0x10d   : > { %v1425_v40 = vadd.f32 %v1377_v51, %v1325_v36  ;;  %v575_v21 = vmul.f32 %v2908_v25, %v541_v41  ;;  %v750_v0 = vsel %vm711_vm1, %v671_v38, %v672_v34  ;;  %v926_v58 = vadd.f32 %v878_v52, %v4901_v12 }
 0x10e   : > { %v3818_v50 = vmul.f32 %v3016_v28, %v727_v32  ;;  %v1249_v62 = vadd.f32 %v1201_v16, %v1149_v54  ;;  %v1401_v42 = vmul.f32 %v3045_v18, %v727_v32  ;;  %v784_v51 = vmul.f32 %v2934_v39, %v750_v0 }
 0x10f   : > { %2192 = vmatmul.mubr.f32.gmra.mrb[6].mxu0 %v1425_v40  ;;  %v623_v14 = vadd.f32 %v575_v21, %v364_v4  ;;  %v1026_v48 = vadd.f32 %v3645_v5, %v926_v58  ;;  %v1178_v38 = vmul.f32 %v3027_v45, %v3720_v23  ;;  %v485_v33 = vrot.slane %v3813_v3, 1 }
 0x110   : > { %v1349_v44 = vadd.f32 %v1301_v8, %v1249_v62  ;;  %v696_v56 = vrot.slane %v3813_v3, 2  ;;  %v902_v16 = vmul.f32 %v2966_v53, %v3549_v46  ;;  %v3829_v36 = vadd.f32 %v807_v63, %v646_v6  ;;  %v3843_v6 = vld [vmem:[%s2872_s28 + $0x80] sm:$0xff] }
 0x111   : > { %v1126_v32 = vadd.f32 %v3660_v27, %v1026_v48  ;;  %v1278_v4 = vmul.f32 %v3032_v20, %v541_v41  ;;  %v388_v5 = vmul.f32 %v2905_v24, %v3728_v57  ;;  %v4902_v54 = vrot.slane %v3728_v57, 1 }
 0x112   : > { %v1449_v52 = vadd.f32 %v1401_v42, %v1349_v44  ;;  %v726_v40 = vsel %vm711_vm1, %v695_v17, %v696_v56  ;;  %v950_v46 = vadd.f32 %v902_v16, %v3520_v55  ;;  %v3846_v27 = vmul.f32 %v3011_v19, %v541_v41 }
 0x113   : > { %v517_v8 = vsel %vm502_vm0, %v4902_v54, %v485_v33  ;;  %v1226_v63 = vadd.f32 %v1178_v38, %v1126_v32  ;;  %v1378_v21 = vmul.f32 %v3045_v18, %v750_v0  ;;  %v3850_v58 = vadd.f32 %v784_v51, %v623_v14 }
 0x114   : > { %v599_v12 = vmul.f32 %v2908_v25, %v517_v8  ;;  %2228 = vmatmul.mubr.f32.gmra.mrb[6].mxu1 %v1449_v52  ;;  %v3853_v62 = vmul.f32 %v3016_v28, %v750_v0  ;;  %v1050_v17 = vadd.f32 %v3675_v29, %v950_v46  ;;  %v1202_v55 = vmul.f32 %v3027_v45, %v3728_v57  ;;  %v3871_v52 = vld [vmem:[%s2872_s28 + $0x140] sm:$0xff] }
 0x115   : > { %v1326_v42 = vadd.f32 %v1278_v4, %v1226_v63  ;;  %v808_v41 = vmul.f32 %v2934_v39, %v726_v40  ;;  %v462_v48 = vrot.slane %v3843_v6, 1  ;;  %v673_v38 = vrot.slane %v3843_v6, 2 }
 0x116   : > { %v647_v44 = vadd.f32 %v599_v12, %v388_v5  ;;  %v1150_v14 = vadd.f32 %v3678_v7, %v1050_v17  ;;  %v1302_v51 = vmul.f32 %v3032_v20, %v517_v8  ;;  %v879_v0 = vmul.f32 %v2966_v53, %v3590_v30 }
 0x117   : > { %v1426_v16 = vadd.f32 %v1378_v21, %v1326_v42  ;;  %v1402_v29 = vmul.f32 %v3045_v18, %v726_v40  ;;  %v365_v32 = vmul.f32 %v2905_v24, %v3781_v15  ;;  %v540_v4 = vsel %vm502_vm0, %v461_v59, %v462_v48 }
 0x118   : > { %v1250_v54 = vadd.f32 %v1202_v55, %v1150_v14  ;;  %v576_v5 = vmul.f32 %v2908_v25, %v540_v4  ;;  %v749_v7 = vsel %vm711_vm1, %v672_v34, %v673_v38  ;;  %v927_v46 = vadd.f32 %v879_v0, %v3543_v37 }
 0x119   : > { %2194 = vmatprep.mubr.f32.mxu0 %v1426_v16  ;;  %v3878_v30 = vmul.f32 %v3011_v19, %v517_v8  ;;  %v3881_v18 = vmul.f32 %v3016_v28, %v726_v40  ;;  %v1179_v59 = vmul.f32 %v3027_v45, %v3781_v15  ;;  %v389_v63 = vmul.f32 %v2905_v24, %v3813_v3 }
 0x11a   : > { %v3887_v21 = vadd.f32 %v808_v41, %v647_v44  ;;  %v1350_v12 = vadd.f32 %v1302_v51, %v1250_v54  ;;  %v1027_v34 = vadd.f32 %v3738_v35, %v927_v46  ;;  %v486_v37 = vrot.slane %v3871_v52, 1  ;;  %v3900_v44 = vld [vmem:[%s2872_s28 + $0x88] sm:$0xff] }
 0x11b   : > { %v624_v17 = vadd.f32 %v576_v5, %v365_v32  ;;  %v785_v8 = vmul.f32 %v2934_v39, %v749_v7  ;;  %v697_v55 = vrot.slane %v3871_v52, 2  ;;  %v903_v40 = vmul.f32 %v2966_v53, %v3623_v43  ;;  %v3912_v32 = vld [vmem:[#allocation6 + $0x8] ss:$0 sm:$0xff] }
 0x11c   : > { %v1450_v42 = vadd.f32 %v1402_v29, %v1350_v12  ;;  %v1127_v14 = vadd.f32 %v3741_v49, %v1027_v34  ;;  %v1279_v0 = vmul.f32 %v3032_v20, %v540_v4  ;;  %v516_v41 = vsel %vm502_vm0, %v485_v33, %v486_v37 }
 0x11d   : > { %v3903_v35 = vmul.f32 %v3011_v19, %v540_v4  ;;  %v600_v51 = vmul.f32 %v2908_v25, %v516_v41  ;;  %v725_v16 = vsel %vm711_vm1, %v696_v56, %v697_v55  ;;  %v951_v43 = vadd.f32 %v903_v40, %v3553_v11 }
 0x11e   : > { %2230 = vmatprep.mubr.f32.mxu1 %v1450_v42  ;;  %v3910_v49 = vmul.f32 %v3016_v28, %v749_v7  ;;  %v1227_v29 = vadd.f32 %v1179_v59, %v1127_v14  ;;  %v1379_v33 = vmul.f32 %v3912_v32, %v749_v7  ;;  %v1203_v4 = vmul.f32 %v3027_v45, %v3813_v3 }
 0x11f   : > { %v3917_v54 = vadd.f32 %v785_v8, %v624_v17  ;;  %v1051_v5 = vadd.f32 %v3752_v9, %v951_v43  ;;  %v366_v11 = vmul.f32 %v2905_v24, %v3843_v6  ;;  %v463_v56 = vrot.slane %v3900_v44, 1 }
 0x120   : > { %v1327_v46 = vadd.f32 %v1279_v0, %v1227_v29  ;;  %v809_v59 = vmul.f32 %v2934_v39, %v725_v16  ;;  %v674_v12 = vrot.slane %v3900_v44, 2  ;;  %v880_v7 = vmul.f32 %v2966_v53, %v3657_v22  ;;  %v4904_v0 = vld [vmem:[#allocation39_spill] sm:$0xff] }
 0x121   : > { %4903 = vst [vmem:[#allocation37_spill] sm:$0xff] %v3917_v54  ;;  %v648_v34 = vadd.f32 %v600_v51, %v389_v63  ;;  %v1151_v17 = vadd.f32 %v3755_v47, %v1051_v5  ;;  %v1303_v8 = vmul.f32 %v3032_v20, %v516_v41  ;;  %v539_v9 = vsel %vm502_vm0, %v462_v48, %v463_v56  ;;  %v3936_v29 = vld [vmem:[%s2872_s28 + $0x148] sm:$0xff] }
 0x122   : > { %v1427_v40 = vadd.f32 %v1379_v33, %v1327_v46  ;;  %v577_v42 = vmul.f32 %v2908_v25, %v539_v9  ;;  %v748_v14 = vsel %vm711_vm1, %v673_v38, %v674_v12  ;;  %v928_v43 = vadd.f32 %v880_v7, %v4904_v0  ;;  %v4906_v0 = vld [vmem:[#allocation40_spill] sm:$0xff] }
 0x123   : > { %v3939_v22 = vmul.f32 %v3011_v19, %v516_v41  ;;  %v3942_v47 = vmul.f32 %v3016_v28, %v725_v16  ;;  %v1251_v63 = vadd.f32 %v1203_v4, %v1151_v17  ;;  %v1403_v51 = vmul.f32 %v3912_v32, %v725_v16 }
 0x124   : > { %2195 = vmatmul.mubr.f32.gmra.mrb[8].mxu0 %v1427_v40  ;;  %v625_v48 = vadd.f32 %v577_v42, %v366_v11  ;;  %v786_v33 = vmul.f32 %v2934_v39, %v748_v14  ;;  %v1028_v38 = vadd.f32 %v3776_v13, %v928_v43  ;;  %v1180_v5 = vmul.f32 %v3027_v45, %v3843_v6 }
 0x125   : > { %v1351_v46 = vadd.f32 %v1303_v8, %v1251_v63  ;;  %v487_v41 = vrot.slane %v3936_v29, 1  ;;  %v698_v7 = vrot.slane %v3936_v29, 2  ;;  %v904_v4 = vmul.f32 %v2966_v53, %v3688_v10  ;;  %v3965_v63 = vld [vmem:[%s2872_s28 + $0x90] sm:$0xff] }
 0x126   : > { %v3953_v17 = vadd.f32 %v809_v59, %v648_v34  ;;  %v1128_v16 = vadd.f32 %v3784_v60, %v1028_v38  ;;  %v1280_v11 = vmul.f32 %v3032_v20, %v539_v9  ;;  %v390_v13 = vmul.f32 %v2905_v24, %v3871_v52 }
 0x127   : > { %v1451_v40 = vadd.f32 %v1403_v51, %v1351_v46  ;;  %v515_v8 = vsel %vm502_vm0, %v486_v37, %v487_v41  ;;  %v724_v42 = vsel %vm711_vm1, %v697_v55, %v698_v7  ;;  %v952_v43 = vadd.f32 %v904_v4, %v4906_v0 }
 0x128   : > { %4905 = vst [vmem:[#allocation38_spill] sm:$0xff] %v3953_v17  ;;  %v3968_v10 = vmul.f32 %v3011_v19, %v539_v9  ;;  %v1228_v60 = vadd.f32 %v1180_v5, %v1128_v16  ;;  %v1380_v59 = vmul.f32 %v3912_v32, %v748_v14  ;;  %v601_v34 = vmul.f32 %v2908_v25, %v515_v8 }
 0x129   : > { %2231 = vmatmul.mubr.f32.gmra.mrb[8].mxu1 %v1451_v40  ;;  %v3972_v51 = vadd.f32 %v786_v33, %v625_v48  ;;  %v3975_v37 = vmul.f32 %v3016_v28, %v748_v14  ;;  %v1052_v55 = vadd.f32 %v3792_v26, %v952_v43  ;;  %v1204_v38 = vmul.f32 %v3027_v45, %v3871_v52  ;;  %v3993_v43 = vld [vmem:[%s2872_s28 + $0x150] sm:$0xff] }
 0x12a   : > { %v1328_v46 = vadd.f32 %v1280_v11, %v1228_v60  ;;  %v810_v9 = vmul.f32 %v2934_v39, %v724_v42  ;;  %v464_v5 = vrot.slane %v3965_v63, 1  ;;  %v675_v4 = vrot.slane %v3965_v63, 2 }
 0x12b   : > { %4907 = vst [vmem:[#allocation29_spill] sm:$0xff] %v3972_v51  ;;  %v649_v16 = vadd.f32 %v601_v34, %v390_v13  ;;  %v1152_v48 = vadd.f32 %v3818_v50, %v1052_v55  ;;  %v1304_v33 = vmul.f32 %v3032_v20, %v515_v8  ;;  %v881_v14 = vmul.f32 %v2966_v53, %v3720_v23  ;;  %v4908_v34 = vld [vmem:[#allocation28_spill] sm:$0xff] }
 0x12c   : > { %v1428_v40 = vadd.f32 %v1380_v59, %v1328_v46  ;;  %v1404_v26 = vmul.f32 %v3912_v32, %v724_v42  ;;  %v367_v11 = vmul.f32 %v2905_v24, %v3900_v44  ;;  %v538_v0 = vsel %vm502_vm0, %v463_v56, %v464_v5 }
 0x12d   : > { %v1252_v60 = vadd.f32 %v1204_v38, %v1152_v48  ;;  %v578_v13 = vmul.f32 %v2908_v25, %v538_v0  ;;  %v747_v50 = vsel %vm711_vm1, %v674_v12, %v675_v4  ;;  %v929_v55 = vadd.f32 %v881_v14, %v4908_v34 }
 0x12e   : > { %2197 = vmatprep.mubr.f32.mxu0 %v1428_v40  ;;  %v4000_v23 = vmul.f32 %v3011_v19, %v515_v8  ;;  %v4003_v59 = vmul.f32 %v3016_v28, %v724_v42  ;;  %v1181_v56 = vmul.f32 %v3027_v45, %v3900_v44  ;;  %v391_v38 = vmul.f32 %v2905_v24, %v3936_v29 }
 0x12f   : > { %v4009_v46 = vadd.f32 %v810_v9, %v649_v16  ;;  %v1352_v48 = vadd.f32 %v1304_v33, %v1252_v60  ;;  %v1029_v12 = vadd.f32 %v3846_v27, %v929_v55  ;;  %v488_v14 = vrot.slane %v3993_v43, 1  ;;  %v4022_v16 = vld [vmem:[%s2872_s28 + $0x98] sm:$0xff] }
 0x130   : > { %v626_v40 = vadd.f32 %v578_v13, %v367_v11  ;;  %v787_v8 = vmul.f32 %v2934_v39, %v747_v50  ;;  %v699_v34 = vrot.slane %v3993_v43, 2  ;;  %v905_v42 = vmul.f32 %v2966_v53, %v3728_v57 }
 0x131   : > { %v1452_v51 = vadd.f32 %v1404_v26, %v1352_v48  ;;  %v1129_v17 = vadd.f32 %v3853_v62, %v1029_v12  ;;  %v1281_v54 = vmul.f32 %v3032_v20, %v538_v0  ;;  %v514_v9 = vsel %vm502_vm0, %v487_v41, %v488_v14 }
 0x132   : > { %v4025_v27 = vmul.f32 %v3011_v19, %v538_v0  ;;  %v602_v33 = vmul.f32 %v2908_v25, %v514_v9  ;;  %v723_v11 = vsel %vm711_vm1, %v698_v7, %v699_v34  ;;  %v953_v57 = vadd.f32 %v905_v42, %v3722_v2 }
 0x133   : > { %2233 = vmatprep.mubr.f32.mxu1 %v1452_v51  ;;  %v4032_v62 = vmul.f32 %v3016_v28, %v747_v50  ;;  %v1229_v26 = vadd.f32 %v1181_v56, %v1129_v17  ;;  %v1381_v60 = vmul.f32 %v3912_v32, %v747_v50  ;;  %v1205_v41 = vmul.f32 %v3027_v45, %v3936_v29 }
 0x134   : > { %v4037_v13 = vadd.f32 %v787_v8, %v626_v40  ;;  %v1053_v0 = vadd.f32 %v3878_v30, %v953_v57  ;;  %v368_v7 = vmul.f32 %v2905_v24, %v3965_v63  ;;  %v465_v2 = vrot.slane %v4022_v16, 1  ;;  %v4056_v57 = vld [vmem:[%s2872_s28 + $0x158] sm:$0xff] }
 0x135   : > { %v1329_v51 = vadd.f32 %v1281_v54, %v1229_v26  ;;  %v811_v55 = vmul.f32 %v2934_v39, %v723_v11  ;;  %v676_v17 = vrot.slane %v4022_v16, 2  ;;  %v882_v50 = vmul.f32 %v2966_v53, %v3781_v15 }
 0x136   : > { %v650_v56 = vadd.f32 %v602_v33, %v391_v38  ;;  %v1153_v48 = vadd.f32 %v3881_v18, %v1053_v0  ;;  %v1305_v12 = vmul.f32 %v3032_v20, %v514_v9  ;;  %v537_v30 = vsel %vm502_vm0, %v464_v5, %v465_v2 }
 0x137   : > { %v1429_v40 = vadd.f32 %v1381_v60, %v1329_v51  ;;  %v579_v8 = vmul.f32 %v2908_v25, %v537_v30  ;;  %v746_v54 = vsel %vm711_vm1, %v675_v4, %v676_v17  ;;  %v930_v42 = vadd.f32 %v882_v50, %v3735_v31 }
 0x138   : > { %v4059_v15 = vmul.f32 %v3011_v19, %v514_v9  ;;  %v4062_v18 = vmul.f32 %v3016_v28, %v723_v11  ;;  %v1253_v38 = vadd.f32 %v1205_v41, %v1153_v48  ;;  %v1405_v33 = vmul.f32 %v3912_v32, %v723_v11 }
 0x139   : > { %2198 = vmatmul.mubr.f32.gmra.mrb[10].mxu0 %v1429_v40  ;;  %v627_v5 = vadd.f32 %v579_v8, %v368_v7  ;;  %v788_v26 = vmul.f32 %v2934_v39, %v746_v54  ;;  %v1030_v4 = vadd.f32 %v3903_v35, %v930_v42  ;;  %v1182_v31 = vmul.f32 %v3027_v45, %v3965_v63  ;;  %v4909_v40 = vld [vmem:[#allocation21_spill] sm:$0xff] }
 0x13a   : > { %v1353_v60 = vadd.f32 %v1305_v12, %v1253_v38  ;;  %v489_v9 = vrot.slane %v4056_v57, 1  ;;  %v700_v0 = vrot.slane %v4056_v57, 2  ;;  %v906_v41 = vmul.f32 %v2966_v53, %v3813_v3  ;;  %v4085_v42 = vld [vmem:[%s2872_s28 + $0xa0] sm:$0xff] }
 0x13b   : > { %v4073_v51 = vadd.f32 %v811_v55, %v650_v56  ;;  %v1130_v11 = vadd.f32 %v3910_v49, %v1030_v4  ;;  %v1282_v7 = vmul.f32 %v3032_v20, %v537_v30  ;;  %v392_v35 = vmul.f32 %v2905_v24, %v3993_v43 }
 0x13c   : > { %v1453_v50 = vadd.f32 %v1405_v33, %v1353_v60  ;;  %v513_v48 = vsel %vm502_vm0, %v488_v14, %v489_v9  ;;  %v722_v12 = vsel %vm711_vm1, %v699_v34, %v700_v0  ;;  %v954_v8 = vadd.f32 %v906_v41, %v4909_v40  ;;  %v4113_v40 = vld [vmem:[%s2872_s28 + $0x160] sm:$0xff] }
 0x13d   : > { %v4088_v3 = vmul.f32 %v3011_v19, %v537_v30  ;;  %v1230_v49 = vadd.f32 %v1182_v31, %v1130_v11  ;;  %v1382_v55 = vmul.f32 %v3912_v32, %v746_v54  ;;  %v603_v56 = vmul.f32 %v2908_v25, %v513_v48 }
 0x13e   : > { %2234 = vmatmul.mubr.f32.gmra.mrb[10].mxu1 %v1453_v50  ;;  %v4092_v38 = vadd.f32 %v788_v26, %v627_v5  ;;  %v4095_v14 = vmul.f32 %v3016_v28, %v746_v54  ;;  %v1054_v34 = vadd.f32 %v3939_v22, %v954_v8  ;;  %v1206_v33 = vmul.f32 %v3027_v45, %v3993_v43 }
 0x13f   : > { %v1330_v4 = vadd.f32 %v1282_v7, %v1230_v49  ;;  %v812_v30 = vmul.f32 %v2934_v39, %v722_v12  ;;  %v466_v31 = vrot.slane %v4085_v42, 1  ;;  %v677_v60 = vrot.slane %v4085_v42, 2 }
 0x140   : > { %4910 = vst [vmem:[#allocation34_spill] sm:$0xff] %v4092_v38  ;;  %v651_v41 = vadd.f32 %v603_v56, %v392_v35  ;;  %v1154_v5 = vadd.f32 %v3942_v47, %v1054_v34  ;;  %v1306_v26 = vmul.f32 %v3032_v20, %v513_v48  ;;  %v883_v54 = vmul.f32 %v2966_v53, %v3843_v6 }
 0x141   : > { %v1430_v11 = vadd.f32 %v1382_v55, %v1330_v4  ;;  %v1406_v22 = vmul.f32 %v3912_v32, %v722_v12  ;;  %v369_v7 = vmul.f32 %v2905_v24, %v4022_v16  ;;  %v536_v50 = vsel %vm502_vm0, %v465_v2, %v466_v31 }
 0x142   : > { %v1254_v8 = vadd.f32 %v1206_v33, %v1154_v5  ;;  %v580_v35 = vmul.f32 %v2908_v25, %v536_v50  ;;  %v745_v47 = vsel %vm711_vm1, %v676_v17, %v677_v60  ;;  %v931_v49 = vadd.f32 %v883_v54, %v3815_v61 }
 0x143   : > { %2200 = vmatprep.mubr.f32.mxu0 %v1430_v11  ;;  %v4120_v6 = vmul.f32 %v3011_v19, %v513_v48  ;;  %v4123_v55 = vmul.f32 %v3016_v28, %v722_v12  ;;  %v1183_v2 = vmul.f32 %v3027_v45, %v4022_v16  ;;  %v393_v56 = vmul.f32 %v2905_v24, %v4056_v57 }
 0x144   : > { %v4129_v34 = vadd.f32 %v812_v30, %v651_v41  ;;  %v1354_v33 = vadd.f32 %v1306_v26, %v1254_v8  ;;  %v1031_v17 = vadd.f32 %v3968_v10, %v931_v49  ;;  %v490_v61 = vrot.slane %v4113_v40, 1  ;;  %v4142_v41 = vld [vmem:[%s2872_s28 + $0xa8] sm:$0xff] }
 0x145   : > { %v628_v4 = vadd.f32 %v580_v35, %v369_v7  ;;  %v789_v48 = vmul.f32 %v2934_v39, %v745_v47  ;;  %v701_v5 = vrot.slane %v4113_v40, 2  ;;  %v907_v12 = vmul.f32 %v2966_v53, %v3871_v52 }
 0x146   : > { %v1454_v54 = vadd.f32 %v1406_v22, %v1354_v33  ;;  %v1131_v11 = vadd.f32 %v3975_v37, %v1031_v17  ;;  %v1283_v38 = vmul.f32 %v3032_v20, %v536_v50  ;;  %v512_v30 = vsel %vm502_vm0, %v489_v9, %v490_v61 }
 0x147   : > { %v4145_v10 = vmul.f32 %v3011_v19, %v536_v50  ;;  %v604_v26 = vmul.f32 %v2908_v25, %v512_v30  ;;  %v721_v7 = vsel %vm711_vm1, %v700_v0, %v701_v5  ;;  %v955_v52 = vadd.f32 %v907_v12, %v3829_v36 }
 0x148   : > { %2236 = vmatprep.mubr.f32.mxu1 %v1454_v54  ;;  %v4152_v37 = vmul.f32 %v3016_v28, %v745_v47  ;;  %v1231_v22 = vadd.f32 %v1183_v2, %v1131_v11  ;;  %v1383_v8 = vmul.f32 %v3912_v32, %v745_v47  ;;  %v1207_v9 = vmul.f32 %v3027_v45, %v4056_v57 }
 0x149   : > { %v4157_v35 = vadd.f32 %v789_v48, %v628_v4  ;;  %v1055_v50 = vadd.f32 %v4000_v23, %v955_v52  ;;  %v370_v0 = vmul.f32 %v2905_v24, %v4085_v42  ;;  %v467_v36 = vrot.slane %v4142_v41, 1  ;;  %v4176_v52 = vld [vmem:[%s2872_s28 + $0x168] sm:$0xff] }
 0x14a   : > { %v1331_v49 = vadd.f32 %v1283_v38, %v1231_v22  ;;  %v813_v33 = vmul.f32 %v2934_v39, %v721_v7  ;;  %v678_v2 = vrot.slane %v4142_v41, 2  ;;  %v884_v47 = vmul.f32 %v2966_v53, %v3900_v44 }
 0x14b   : > { %v652_v17 = vadd.f32 %v604_v26, %v393_v56  ;;  %v1155_v4 = vadd.f32 %v4003_v59, %v1055_v50  ;;  %v1307_v48 = vmul.f32 %v3032_v20, %v512_v30  ;;  %v535_v23 = vsel %vm502_vm0, %v466_v31, %v467_v36 }
 0x14c   : > { %v1431_v12 = vadd.f32 %v1383_v8, %v1331_v49  ;;  %v581_v54 = vmul.f32 %v2908_v25, %v535_v23  ;;  %v744_v38 = vsel %vm711_vm1, %v677_v60, %v678_v2  ;;  %v932_v11 = vadd.f32 %v884_v47, %v3850_v58 }
 0x14d   : > { %v4179_v44 = vmul.f32 %v3011_v19, %v512_v30  ;;  %v4182_v59 = vmul.f32 %v3016_v28, %v721_v7  ;;  %v1255_v56 = vadd.f32 %v1207_v9, %v1155_v4  ;;  %v1407_v26 = vmul.f32 %v3912_v32, %v721_v7 }
 0x14e   : > { %2201 = vmatmul.mubr.f32.gmra.mrb[12].mxu0 %v1431_v12  ;;  %v629_v31 = vadd.f32 %v581_v54, %v370_v0  ;;  %v790_v22 = vmul.f32 %v2934_v39, %v744_v38  ;;  %v1032_v60 = vadd.f32 %v4025_v27, %v932_v11  ;;  %v1184_v58 = vmul.f32 %v3027_v45, %v4085_v42  ;;  %v4205_v54 = vld [vmem:[%s2872_s28 + $0xb0] sm:$0xff] }
 0x14f   : > { %v1355_v8 = vadd.f32 %v1307_v48, %v1255_v56  ;;  %v491_v30 = vrot.slane %v4176_v52, 1  ;;  %v702_v50 = vrot.slane %v4176_v52, 2  ;;  %v908_v9 = vmul.f32 %v2966_v53, %v3936_v29 }
 0x150   : > { %v4193_v49 = vadd.f32 %v813_v33, %v652_v17  ;;  %v1132_v7 = vadd.f32 %v4032_v62, %v1032_v60  ;;  %v1284_v0 = vmul.f32 %v3032_v20, %v535_v23  ;;  %v394_v27 = vmul.f32 %v2905_v24, %v4113_v40 }
 0x151   : > { %v1455_v47 = vadd.f32 %v1407_v26, %v1355_v8  ;;  %v511_v4 = vsel %vm502_vm0, %v490_v61, %v491_v30  ;;  %v720_v48 = vsel %vm711_vm1, %v701_v5, %v702_v50  ;;  %v956_v12 = vadd.f32 %v908_v9, %v3887_v21 }
 0x152   : > { %v4208_v29 = vmul.f32 %v3011_v19, %v535_v23  ;;  %v1232_v62 = vadd.f32 %v1184_v58, %v1132_v7  ;;  %v1384_v33 = vmul.f32 %v3912_v32, %v744_v38  ;;  %v605_v17 = vmul.f32 %v2908_v25, %v511_v4 }
 0x153   : > { %2237 = vmatmul.mubr.f32.gmra.mrb[12].mxu1 %v1455_v47  ;;  %v4212_v11 = vadd.f32 %v790_v22, %v629_v31  ;;  %v4215_v61 = vmul.f32 %v3016_v28, %v744_v38  ;;  %v1056_v5 = vadd.f32 %v4059_v15, %v956_v12  ;;  %v1208_v21 = vmul.f32 %v3027_v45, %v4113_v40  ;;  %v4912_v12 = vld [vmem:[#allocation37_spill] sm:$0xff] }
 0x154   : > { %v1332_v56 = vadd.f32 %v1284_v0, %v1232_v62  ;;  %v814_v23 = vmul.f32 %v2934_v39, %v720_v48  ;;  %v468_v26 = vrot.slane %v4205_v54, 1  ;;  %v679_v60 = vrot.slane %v4205_v54, 2  ;;  %v4235_v0 = vld [vmem:[%s2872_s28 + $0x170] sm:$0xff] }
 0x155   : > { %4911 = vst [vmem:[#allocation35_spill] sm:$0xff] %v4212_v11  ;;  %v653_v58 = vadd.f32 %v605_v17, %v394_v27  ;;  %v1156_v31 = vadd.f32 %v4062_v18, %v1056_v5  ;;  %v1308_v22 = vmul.f32 %v3032_v20, %v511_v4  ;;  %v885_v38 = vmul.f32 %v2966_v53, %v3965_v63 }
 0x156   : > { %v1432_v8 = vadd.f32 %v1384_v33, %v1332_v56  ;;  %v4228_v15 = vmul.f32 %v3011_v19, %v511_v4  ;;  %v371_v9 = vmul.f32 %v2905_v24, %v4142_v41  ;;  %v534_v7 = vsel %vm502_vm0, %v467_v36, %v468_v26 }
 0x157   : > { %v1256_v27 = vadd.f32 %v1208_v21, %v1156_v31  ;;  %v1408_v18 = vmul.f32 %v3912_v32, %v720_v48  ;;  %v743_v47 = vsel %vm711_vm1, %v678_v2, %v679_v60  ;;  %v933_v63 = vadd.f32 %v885_v38, %v4912_v12 }
 0x158   : > { %2203 = vmatprep.mubr.f32.mxu0 %v1432_v8  ;;  %v4242_v4 = vmul.f32 %v3016_v28, %v720_v48  ;;  %v582_v62 = vmul.f32 %v2908_v25, %v534_v7  ;;  %v1185_v36 = vmul.f32 %v3027_v45, %v4142_v41  ;;  %v395_v33 = vmul.f32 %v2905_v24, %v4176_v52 }
 0x159   : > { %v4249_v17 = vadd.f32 %v814_v23, %v653_v58  ;;  %v1356_v5 = vadd.f32 %v1308_v22, %v1256_v27  ;;  %v1033_v2 = vadd.f32 %v4088_v3, %v933_v63  ;;  %v492_v21 = vrot.slane %v4235_v0, 1  ;;  %v4265_v58 = vld [vmem:[%s2872_s28 + $0xb8] sm:$0xff] }
 0x15a   : > { %v791_v56 = vmul.f32 %v2934_v39, %v743_v47  ;;  %v4255_v48 = vmul.f32 %v3011_v19, %v534_v7  ;;  %v703_v31 = vrot.slane %v4235_v0, 2  ;;  %v909_v38 = vmul.f32 %v2966_v53, %v3993_v43 }
 0x15b   : > { %4913 = vst [vmem:[#allocation36_spill] sm:$0xff] %v4249_v17  ;;  %v1456_v8 = vadd.f32 %v1408_v18, %v1356_v5  ;;  %v1133_v12 = vadd.f32 %v4095_v14, %v1033_v2  ;;  %v1285_v23 = vmul.f32 %v3032_v20, %v534_v7  ;;  %v510_v3 = vsel %vm502_vm0, %v491_v30, %v492_v21  ;;  %v4914_v17 = vld [vmem:[#allocation38_spill] sm:$0xff] }
 0x15c   : > { %v630_v22 = vadd.f32 %v582_v62, %v371_v9  ;;  %v606_v27 = vmul.f32 %v2908_v25, %v510_v3  ;;  %v719_v63 = vsel %vm711_vm1, %v702_v50, %v703_v31  ;;  %v957_v11 = vadd.f32 %v909_v38, %v4914_v17 }
 0x15d   : > { %2239 = vmatprep.mubr.f32.mxu1 %v1456_v8  ;;  %v4272_v43 = vmul.f32 %v3016_v28, %v743_v47  ;;  %v1233_v14 = vadd.f32 %v1185_v36, %v1133_v12  ;;  %v1385_v7 = vmul.f32 %v3912_v32, %v743_v47  ;;  %v1209_v30 = vmul.f32 %v3027_v45, %v4176_v52 }
 0x15e   : > { %v815_v18 = vmul.f32 %v2934_v39, %v719_v63  ;;  %v1057_v9 = vadd.f32 %v4120_v6, %v957_v11  ;;  %v372_v50 = vmul.f32 %v2905_v24, %v4205_v54  ;;  %v469_v62 = vrot.slane %v4265_v58, 1 }
 0x15f   : > { %v1333_v17 = vadd.f32 %v1285_v23, %v1233_v14  ;;  %v654_v5 = vadd.f32 %v606_v27, %v395_v33  ;;  %v680_v2 = vrot.slane %v4265_v58, 2  ;;  %v886_v47 = vmul.f32 %v2966_v53, %v4022_v16  ;;  %v4915_v23 = vld [vmem:[#allocation29_spill] sm:$0xff] }
 0x160   : > { %v4285_v36 = vadd.f32 %v791_v56, %v630_v22  ;;  %v1157_v38 = vadd.f32 %v4123_v55, %v1057_v9  ;;  %v1309_v8 = vmul.f32 %v3032_v20, %v510_v3  ;;  %v533_v6 = vsel %vm502_vm0, %v468_v26, %v469_v62  ;;  %v4299_v14 = vld [vmem:[%s2872_s28 + $0x178] sm:$0xff] }
 0x161   : > { %v1433_v11 = vadd.f32 %v1385_v7, %v1333_v17  ;;  %v4292_v12 = vmul.f32 %v3011_v19, %v510_v3  ;;  %v4295_v33 = vmul.f32 %v3016_v28, %v719_v63  ;;  %v934_v27 = vadd.f32 %v886_v47, %v4915_v23 }
 0x162   : > { %v1257_v16 = vadd.f32 %v1209_v30, %v1157_v38  ;;  %v1409_v56 = vmul.f32 %v3912_v32, %v719_v63  ;;  %v742_v55 = vsel %vm711_vm1, %v679_v60, %v680_v2  ;;  %v1186_v26 = vmul.f32 %v3027_v45, %v4205_v54 }
 0x163   : > { %2204 = vmatmul.mubr.f32.gmra.mrb[14].mxu0 %v1433_v11  ;;  %v4306_v22 = vadd.f32 %v815_v18, %v654_v5  ;;  %v583_v3 = vmul.f32 %v2908_v25, %v533_v6  ;;  %v1034_v7 = vadd.f32 %v4145_v10, %v934_v27  ;;  %v396_v9 = vmul.f32 %v2905_v24, %v4235_v0 }
 0x164   : > { %v1357_v17 = vadd.f32 %v1309_v8, %v1257_v16  ;;  %v493_v30 = vrot.slane %v4299_v14, 1  ;;  %v704_v63 = vrot.slane %v4299_v14, 2  ;;  %v910_v60 = vmul.f32 %v2966_v53, %v4056_v57 }
 0x165   : > { %4916 = vst [vmem:[#allocation39_spill] sm:$0xff] %v4306_v22  ;;  %v792_v47 = vmul.f32 %v2934_v39, %v742_v55  ;;  %v4318_v18 = vmul.f32 %v3011_v19, %v533_v6  ;;  %v1134_v5 = vadd.f32 %v4152_v37, %v1034_v7  ;;  %v1286_v10 = vmul.f32 %v3032_v20, %v533_v6 }
 0x166   : > { %v1457_v38 = vadd.f32 %v1409_v56, %v1357_v17  ;;  %v509_v8 = vsel %vm502_vm0, %v492_v21, %v493_v30  ;;  %v718_v11 = vsel %vm711_vm1, %v703_v31, %v704_v63  ;;  %v958_v23 = vadd.f32 %v910_v60, %v4009_v46 }
 0x167   : > { %v631_v27 = vadd.f32 %v583_v3, %v372_v50  ;;  %v1234_v57 = vadd.f32 %v1186_v26, %v1134_v5  ;;  %v1386_v16 = vmul.f32 %v3912_v32, %v742_v55  ;;  %v607_v22 = vmul.f32 %v2908_v25, %v509_v8  ;;  %v4917_v26 = vld [vmem:[#allocation18_spill] sm:$0xff] }
 0x168   : > { %2240 = vmatmul.mubr.f32.gmra.mrb[14].mxu1 %v1457_v38  ;;  %v816_v37 = vmul.f32 %v2934_v39, %v718_v11  ;;  %v1058_v6 = vadd.f32 %v4179_v44, %v958_v23  ;;  %v1210_v21 = vmul.f32 %v3027_v45, %v4235_v0  ;;  %v373_v31 = vmul.f32 %v2905_v24, %v4265_v58 }
 0x169   : > { %v1334_v56 = vadd.f32 %v1286_v10, %v1234_v57  ;;  %v655_v46 = vadd.f32 %v607_v22, %v396_v9  ;;  %v1310_v50 = vmul.f32 %v3032_v20, %v509_v8  ;;  %v4918_v3 = vrot.slane %v4917_v26, 1  ;;  %v4349_v22 = vld [vmem:[%s2872_s28 + $0x180] sm:$0xff] }
 0x16a   : > { %v1158_v17 = vadd.f32 %v4182_v59, %v1058_v6  ;;  %v4919_v44 = vrot.slane %v4917_v26, 2  ;;  %v887_v10 = vmul.f32 %v2966_v53, %v4085_v42  ;;  %v4351_v9 = vadd.f32 %v792_v47, %v631_v27 }
 0x16b   : > { %v532_v7 = vsel %vm502_vm0, %v469_v62, %v4918_v3  ;;  %v4354_v38 = vmul.f32 %v3016_v28, %v742_v55  ;;  %v1434_v62 = vadd.f32 %v1386_v16, %v1334_v56  ;;  %v4357_v59 = vmul.f32 %v3011_v19, %v509_v8 }
 0x16c   : > { %v584_v60 = vmul.f32 %v2908_v25, %v532_v7  ;;  %v741_v5 = vsel %vm711_vm1, %v680_v2, %v4919_v44  ;;  %v4360_v23 = vmul.f32 %v3016_v28, %v718_v11  ;;  %v1258_v57 = vadd.f32 %v1210_v21, %v1158_v17 }
 0x16d   : > { %v1410_v2 = vmul.f32 %v3912_v32, %v718_v11  ;;  %v935_v6 = vadd.f32 %v887_v10, %v4037_v13  ;;  %2206 = vmatprep.mubr.f32.mxu0 %v1434_v62  ;;  %v4364_v42 = vadd.f32 %v816_v37, %v655_v46  ;;  %v793_v27 = vmul.f32 %v2934_v39, %v741_v5  ;;  %v4920_v10 = vld [vmem:[#allocation34_spill] sm:$0xff] }
 0x16e   : > { %v632_v47 = vadd.f32 %v584_v60, %v373_v31  ;;  %v494_v55 = vrot.slane %v4349_v22, 1  ;;  %v1358_v16 = vadd.f32 %v1310_v50, %v1258_v57  ;;  %v1187_v56 = vmul.f32 %v3027_v45, %v4265_v58 }
 0x16f   : > { %v1035_v8 = vadd.f32 %v4208_v29, %v935_v6  ;;  %v705_v21 = vrot.slane %v4349_v22, 2  ;;  %v4373_v11 = vmul.f32 %v3011_v19, %v532_v7  ;;  %v911_v37 = vmul.f32 %v2966_v53, %v4113_v40 }
 0x170   : > { %v508_v13 = vsel %vm502_vm0, %v493_v30, %v494_v55  ;;  %v888_v31 = vmul.f32 %v2966_v53, %v4142_v41  ;;  %v1458_v46 = vadd.f32 %v1410_v2, %v1358_v16  ;;  %v1287_v50 = vmul.f32 %v3032_v20, %v532_v7  ;;  %v4393_v41 = vld [vmem:[%s2872_s28 + $0x188] sm:$0xff]  ;;  %v4408_v2 = vld [vmem:[%s2872_s28 + $0xc0] sm:$0xff] }
 0x171   : > { %v1135_v29 = vadd.f32 %v4215_v61, %v1035_v8  ;;  %v717_v26 = vsel %vm711_vm1, %v704_v63, %v705_v21  ;;  %v4386_v3 = vmul.f32 %v3016_v28, %v741_v5  ;;  %v1387_v30 = vmul.f32 %v3912_v32, %v741_v5 }
 0x172   : > { %v397_v40 = vmul.f32 %v2905_v24, %v4299_v14  ;;  %v959_v17 = vadd.f32 %v911_v37, %v4073_v51  ;;  %2242 = vmatprep.mubr.f32.mxu1 %v1458_v46  ;;  %v4395_v61 = vadd.f32 %v793_v27, %v632_v47  ;;  %v608_v60 = vmul.f32 %v2908_v25, %v508_v13 }
 0x173   : > { %v1235_v7 = vadd.f32 %v1187_v56, %v1135_v29  ;;  %v1211_v63 = vmul.f32 %v3027_v45, %v4299_v14  ;;  %v817_v44 = vmul.f32 %v2934_v39, %v717_v26  ;;  %v4402_v5 = vmul.f32 %v3011_v19, %v508_v13  ;;  %v4921_v56 = vld [vmem:[#allocation19_spill] sm:$0xff] }
 0x174   : > { %v1059_v24 = vadd.f32 %v4228_v15, %v959_v17  ;;  %v936_v51 = vadd.f32 %v888_v31, %v4920_v10  ;;  %v1311_v57 = vmul.f32 %v3032_v20, %v508_v13  ;;  %v1188_v25 = vmul.f32 %v4408_v2, %v3027_v45  ;;  %v4428_v29 = vld [vmem:[%s2872_s28 + $0x190] sm:$0xff] }
 0x175   : > { %v1335_v62 = vadd.f32 %v1287_v50, %v1235_v7  ;;  %v495_v6 = vrot.slane %v4393_v41, 1  ;;  %v706_v27 = vrot.slane %v4393_v41, 2  ;;  %v912_v15 = vmul.f32 %v2966_v53, %v4176_v52  ;;  %v4922_v50 = vld [vmem:[#allocation24_spill] sm:$0xff] }
 0x176   : > { %v1159_v39 = vadd.f32 %v4242_v4, %v1059_v24  ;;  %v1036_v47 = vadd.f32 %v4255_v48, %v936_v51  ;;  %v1411_v8 = vmul.f32 %v3912_v32, %v717_v26  ;;  %v1288_v13 = vmul.f32 %v3032_v20, %v4921_v56 }
 0x177   : > { %v1435_v16 = vadd.f32 %v1387_v30, %v1335_v62  ;;  %v889_v37 = vmul.f32 %v2966_v53, %v4205_v54  ;;  %v507_v48 = vsel %vm502_vm0, %v494_v55, %v495_v6  ;;  %v960_v46 = vadd.f32 %v912_v15, %v4129_v34 }
 0x178   : > { %v1259_v31 = vadd.f32 %v1211_v63, %v1159_v39  ;;  %v1136_v4 = vadd.f32 %v4272_v43, %v1036_v47  ;;  %v4431_v52 = vmul.f32 %v3016_v28, %v717_v26  ;;  %v1388_v30 = vmul.f32 %v3912_v32, %v4922_v50  ;;  %v4443_v26 = vld [vmem:[%s2872_s28 + $0xc8] sm:$0xff] }
 0x179   : > { %2207 = vmatmul.mubr.f32.gmra.mrb[16].mxu0 %v1435_v16  ;;  %v716_v54 = vsel %vm711_vm1, %v705_v21, %v706_v27  ;;  %v1212_v43 = vmul.f32 %v3027_v45, %v4349_v22  ;;  %v1060_v55 = vadd.f32 %v4292_v12, %v960_v46  ;;  %v937_v34 = vadd.f32 %v889_v37, %v4157_v35  ;;  %v4923_v35 = vld [vmem:[#allocation31_spill] sm:$0xff] }
 0x17a   : > { %v1359_v17 = vadd.f32 %v1311_v57, %v1259_v31  ;;  %v1236_v7 = vadd.f32 %v1188_v25, %v1136_v4  ;;  %v656_v63 = vadd.f32 %v608_v60, %v397_v40  ;;  %v1312_v24 = vmul.f32 %v3032_v20, %v507_v48  ;;  %v4471_v37 = vld [vmem:[%s2872_s28 + $0x198] sm:$0xff] }
 0x17b   : > { %v1189_v10 = vmul.f32 %v4443_v26, %v3027_v45  ;;  %v496_v51 = vrot.slane %v4428_v29, 1  ;;  %v1160_v57 = vadd.f32 %v4295_v33, %v1060_v55  ;;  %v1037_v25 = vadd.f32 %v4318_v18, %v937_v34  ;;  %v4924_v4 = vld [vmem:[#allocation32_spill] sm:$0xff] }
 0x17c   : > { %v1459_v21 = vadd.f32 %v1411_v8, %v1359_v17  ;;  %v1336_v62 = vadd.f32 %v1288_v13, %v1236_v7  ;;  %v1412_v12 = vmul.f32 %v3912_v32, %v716_v54  ;;  %v1289_v40 = vmul.f32 %v3032_v20, %v4923_v35  ;;  %v4484_v7 = vld [vmem:[%s2872_s28 + $0xd0] sm:$0xff] }
 0x17d   : > { %v707_v60 = vrot.slane %v4428_v29, 2  ;;  %v913_v39 = vmul.f32 %v2966_v53, %v4235_v0  ;;  %v1260_v15 = vadd.f32 %v1212_v43, %v1160_v57  ;;  %v1137_v16 = vadd.f32 %v4354_v38, %v1037_v25 }
 0x17e   : > { %2243 = vmatmul.mubr.f32.gmra.mrb[16].mxu1 %v1459_v21  ;;  %v1436_v47 = vadd.f32 %v1388_v30, %v1336_v62  ;;  %v4459_v33 = vsel %vm502_vm0, %v495_v6, %v496_v51  ;;  %v4461_v18 = vadd.f32 %v817_v44, %v656_v63  ;;  %v890_v0 = vmul.f32 %v2966_v53, %v4265_v58  ;;  %v4925_v58 = vld [vmem:[#allocation35_spill] sm:$0xff]  ;;  %v4926_v62 = vld [vmem:[#allocation25_spill] sm:$0xff] }
 0x17f   : > { %v4465_v8 = vsel %vm711_vm1, %v706_v27, %v707_v60  ;;  %v961_v13 = vadd.f32 %v913_v39, %v4193_v49  ;;  %v1360_v38 = vadd.f32 %v1312_v24, %v1260_v15  ;;  %v1237_v31 = vadd.f32 %v1189_v10, %v1137_v16 }
 0x180   : > { %2209 = vmatprep.mubr.f32.mxu0 %v1436_v47  ;;  %v1389_v6 = vmul.f32 %v3912_v32, %v4924_v4  ;;  %v1213_v44 = vmul.f32 %v3027_v45, %v4393_v41  ;;  %v1313_v27 = vmul.f32 %v3032_v20, %v4459_v33  ;;  %v1413_v49 = vmul.f32 %v3912_v32, %v4465_v8 }
 0x181   : > { %v1061_v46 = vadd.f32 %v4357_v59, %v961_v13  ;;  %v938_v30 = vadd.f32 %v890_v0, %v4925_v58  ;;  %v1460_v43 = vadd.f32 %v1412_v12, %v1360_v38  ;;  %v1337_v17 = vadd.f32 %v1289_v40, %v1237_v31  ;;  %v344_v38 = vld [vmem:[%s2872_s28 + $0x1a0] sm:$0xff] }
 0x182   : > { %v1190_v55 = vmul.f32 %v4484_v7, %v3027_v45  ;;  %v497_v34 = vrot.slane %v4471_v37, 1  ;;  %v708_v24 = vrot.slane %v4471_v37, 2  ;;  %v914_v10 = vmul.f32 %v2966_v53, %v4299_v14  ;;  %v4927_v14 = vld [vmem:[#allocation36_spill] sm:$0xff] }
 0x183   : > { %v1161_v63 = vadd.f32 %v4360_v23, %v1061_v46  ;;  %v1038_v59 = vadd.f32 %v4373_v11, %v938_v30  ;;  %2245 = vmatprep.mubr.f32.mxu1 %v1460_v43  ;;  %v1437_v21 = vadd.f32 %v1389_v6, %v1337_v17  ;;  %v1290_v57 = vmul.f32 %v3032_v20, %v4926_v62 }
 0x184   : > { %v4498_v25 = vsel %vm502_vm0, %v496_v51, %v497_v34  ;;  %v891_v23 = vmul.f32 %v4408_v2, %v2966_v53  ;;  %v4505_v40 = vsel %vm711_vm1, %v707_v60, %v708_v24  ;;  %v962_v39 = vadd.f32 %v914_v10, %v4927_v14  ;;  %v4928_v51 = vld [vmem:[#allocation27_spill] sm:$0xff] }
 0x185   : > { %v1261_v12 = vadd.f32 %v1213_v44, %v1161_v63  ;;  %v1138_v11 = vadd.f32 %v4386_v3, %v1038_v59  ;;  %v1015_v47 = vmul.f32 %v3011_v19, %v507_v48  ;;  %v1115_v15 = vmul.f32 %v3016_v28, %v716_v54  ;;  %2210 = vmatmul.mubr.f32.gmra.mrb[18].mxu0 %v1437_v21  ;;  %v4929_v63 = vld [vmem:[#allocation20_spill] sm:$0xff]  ;;  %v4930_v59 = vld [vmem:[#allocation23_spill] sm:$0xff] }
 0x186   : > { %v1390_v16 = vmul.f32 %v3912_v32, %v4928_v51  ;;  %v1214_v2 = vmul.f32 %v3027_v45, %v4428_v29  ;;  %v1062_v0 = vadd.f32 %v4402_v5, %v962_v39  ;;  %v939_v60 = vadd.f32 %v891_v23, %v4285_v36  ;;  %v2408_v5 = vld [vmem:[%s2872_s28 + $0xd8] sm:$0xff]  ;;  %v4545_v14 = vld [vmem:[%s2872_s28 + $0x1a8] sm:$0xff] }
 0x187   : > { %v1361_v13 = vadd.f32 %v1313_v27, %v1261_v12  ;;  %v1238_v3 = vadd.f32 %v1190_v55, %v1138_v11  ;;  %v1314_v48 = vmul.f32 %v3032_v20, %v4498_v25  ;;  %v1414_v54 = vmul.f32 %v3912_v32, %v4505_v40 }
 0x188   : > { %v991_v31 = vmul.f32 %v3011_v19, %v4921_v56  ;;  %v1091_v6 = vmul.f32 %v3016_v28, %v4922_v50  ;;  %v1162_v27 = vadd.f32 %v4431_v52, %v1062_v0  ;;  %v1191_v36 = vmul.f32 %v2408_v5, %v3027_v45  ;;  %v2409_v0 = vld [vmem:[%s2872_s28 + $0xe0] sm:$0xff] }
 0x189   : > { %v1461_v44 = vadd.f32 %v1413_v49, %v1361_v13  ;;  %v1338_v46 = vadd.f32 %v1290_v57, %v1238_v3  ;;  %v498_v30 = vrot.slane %v344_v38, 1  ;;  %v709_v43 = vrot.slane %v344_v38, 2  ;;  %v4931_v57 = vld [vmem:[#allocation39_spill] sm:$0xff]  ;;  %v4933_v5 = vld [vmem:[#allocation33_spill] sm:$0xff] }
 0x18a   : > { %v1039_v58 = vadd.f32 %v991_v31, %v939_v60  ;;  %v915_v17 = vmul.f32 %v2966_v53, %v4349_v22  ;;  %v1262_v56 = vadd.f32 %v1214_v2, %v1162_v27  ;;  %v1291_v50 = vmul.f32 %v3032_v20, %v4929_v63 }
 0x18b   : > { %2246 = vmatmul.mubr.f32.gmra.mrb[18].mxu1 %v1461_v44  ;;  %v1438_v55 = vadd.f32 %v1390_v16, %v1338_v46  ;;  %v892_v49 = vmul.f32 %v4443_v26, %v2966_v53  ;;  %v1391_v10 = vmul.f32 %v3912_v32, %v4930_v59  ;;  %v504_v21 = vsel %vm502_vm0, %v497_v34, %v498_v30  ;;  %v4932_v46 = vld [vmem:[#allocation30_spill] sm:$0xff] }
 0x18c   : > { %v1139_v52 = vadd.f32 %v1091_v6, %v1039_v58  ;;  %v963_v23 = vadd.f32 %v915_v17, %v4931_v57  ;;  %v1362_v22 = vadd.f32 %v1314_v48, %v1262_v56  ;;  %v713_v12 = vsel %vm711_vm1, %v708_v24, %v709_v43 }
 0x18d   : > { %2212 = vmatprep.mubr.f32.mxu0 %v1438_v55  ;;  %v1215_v11 = vmul.f32 %v3027_v45, %v4471_v37  ;;  %v940_v26 = vadd.f32 %v892_v49, %v4351_v9  ;;  %v992_v2 = vmul.f32 %v3011_v19, %v4923_v35  ;;  %v1092_v34 = vmul.f32 %v3016_v28, %v4924_v4 }
 0x18e   : > { %v1239_v39 = vadd.f32 %v1191_v36, %v1139_v52  ;;  %v1063_v16 = vadd.f32 %v1015_v47, %v963_v23  ;;  %v1016_v13 = vmul.f32 %v3011_v19, %v4459_v33  ;;  %v1462_v3 = vadd.f32 %v1414_v54, %v1362_v22  ;;  %v2410_v52 = vld [vmem:[%s2872_s28 + $0xe8] sm:$0xff] }
 0x18f   : > { %v1315_v24 = vmul.f32 %v3032_v20, %v504_v21  ;;  %v1192_v37 = vmul.f32 %v2409_v0, %v3027_v45  ;;  %v1040_v48 = vadd.f32 %v992_v2, %v940_v26  ;;  %v499_v47 = vrot.slane %v4545_v14, 1  ;;  %v4935_v26 = vld [vmem:[#allocation26_spill] sm:$0xff] }
 0x190   : > { %v1339_v9 = vadd.f32 %v1291_v50, %v1239_v39  ;;  %v1163_v60 = vadd.f32 %v1115_v15, %v1063_v16  ;;  %2248 = vmatprep.mubr.f32.mxu1 %v1462_v3  ;;  %v1415_v35 = vmul.f32 %v3912_v32, %v713_v12  ;;  %v710_v31 = vrot.slane %v4545_v14, 2  ;;  %v2411_v12 = vld [vmem:[#allocation6 + $0x8] ss:$0 sm:$0xff] }
 0x191   : > { %v916_v4 = vmul.f32 %v2966_v53, %v4393_v41  ;;  %v893_v33 = vmul.f32 %v4484_v7, %v2966_v53  ;;  %v1140_v44 = vadd.f32 %v1092_v34, %v1040_v48  ;;  %v1292_v15 = vmul.f32 %v3032_v20, %v4932_v46 }
 0x192   : > { %v1439_v54 = vadd.f32 %v1391_v10, %v1339_v9  ;;  %v1263_v6 = vadd.f32 %v1215_v11, %v1163_v60  ;;  %v1116_v27 = vmul.f32 %v3016_v28, %v4465_v8  ;;  %v1392_v36 = vmul.f32 %v3912_v32, %v4933_v5 }
 0x193   : > { %v964_v58 = vadd.f32 %v916_v4, %v4364_v42  ;;  %v941_v41 = vadd.f32 %v893_v33, %v4395_v61  ;;  %v1240_v7 = vadd.f32 %v1192_v37, %v1140_v44  ;;  %v503_v55 = vsel %vm502_vm0, %v498_v30, %v499_v47  ;;  %v4605_v37 = vld [vmem:[#allocation9] ss:$0 sm:$0xff] }
 0x194   : > { %2213 = vmatmul.mubr.f32.gmra.mrb[20].mxu0 %v1439_v54  ;;  %v1363_v17 = vadd.f32 %v1315_v24, %v1263_v6  ;;  %v993_v56 = vmul.f32 %v3011_v19, %v4926_v62  ;;  %v712_v8 = vsel %vm711_vm1, %v709_v43, %v710_v31  ;;  %v1216_v50 = vmul.f32 %v3027_v45, %v344_v38 }
 0x195   : > { %v1064_v63 = vadd.f32 %v1016_v13, %v964_v58  ;;  %v1093_v32 = vmul.f32 %v3016_v28, %v4928_v51  ;;  %v1340_v61 = vadd.f32 %v1292_v15, %v1240_v7  ;;  %v1193_v59 = vmul.f32 %v2410_v52, %v3027_v45  ;;  %v4934_v51 = vld [vmem:[#allocation22_spill] sm:$0xff] }
 0x196   : > { %v1463_v42 = vadd.f32 %v1415_v35, %v1363_v17  ;;  %v1041_v49 = vadd.f32 %v993_v56, %v941_v41  ;;  %v1017_v30 = vmul.f32 %v3011_v19, %v4498_v25  ;;  %v1316_v62 = vmul.f32 %v3032_v20, %v503_v55 }
 0x197   : > { %v1164_v10 = vadd.f32 %v1116_v27, %v1064_v63  ;;  %v917_v43 = vmul.f32 %v2966_v53, %v4428_v29  ;;  %v1440_v38 = vadd.f32 %v1392_v36, %v1340_v61  ;;  %v1293_v57 = vmul.f32 %v3032_v20, %v4934_v51  ;;  %v4936_v53 = vld [vmem:[#allocation17_spill] sm:$0xff] }
 0x198   : > { %2249 = vmatmul.mubr.f32.gmra.mrb[20].mxu1 %v1463_v42  ;;  %v1141_v21 = vadd.f32 %v1093_v32, %v1041_v49  ;;  %v1117_v23 = vmul.f32 %v3016_v28, %v4505_v40  ;;  %v1416_v11 = vmul.f32 %v2411_v12, %v712_v8  ;;  %v1393_v39 = vmul.f32 %v2411_v12, %v4935_v26 }
 0x199   : > { %v1264_v22 = vadd.f32 %v1216_v50, %v1164_v10  ;;  %v965_v19 = vadd.f32 %v917_v43, %v4461_v18  ;;  %2215 = vmatprep.mubr.f32.mxu0 %v1440_v38  ;;  %v4937_v29 = vrot.slane %v4936_v53, 1  ;;  %v1217_v13 = vmul.f32 %v3027_v45, %v4545_v14 }
 0x19a   : > { %v1241_v25 = vadd.f32 %v1193_v59, %v1141_v21  ;;  %v4938_v40 = vrot.slane %v4936_v53, 2 }
 0x19b   : > { %v556_v16 = vsel %vm502_vm0, %v499_v47, %v4937_v29  ;;  %v1364_v2 = vadd.f32 %v1316_v62, %v1264_v22  ;;  %v1065_v34 = vadd.f32 %v1017_v30, %v965_v19  ;;  %v2184_v47 = vpop.f32.mrb[0].mxu0 }
 0x19c   : > { %v1341_v28 = vadd.f32 %v1293_v57, %v1241_v25  ;;  %v765_v18 = vsel %vm711_vm1, %v710_v31, %v4938_v40  ;;  %v1317_v0 = vmul.f32 %v3032_v20, %v556_v16  ;;  %v1657_v45 = vadd.f32 %v2184_v47, %v4605_v37  ;;  %v1651_v14 = vpop.f32.mrb[1].mxu0 }
 0x19d   : > { %v1464_v3 = vadd.f32 %v1416_v11, %v1364_v2  ;;  %v1165_v24 = vadd.f32 %v1117_v23, %v1065_v34  ;;  %v1417_v48 = vmul.f32 %v2411_v12, %v765_v18  ;;  %v1652_v4 = vadd.f32 %v4605_v37, %v1651_v14 }
 0x19e   : > { %v1441_v9 = vadd.f32 %v1393_v39, %v1341_v28  ;;  %1891 = vst [vmem:[%s4609_s25 + $0x8] sm:$0xff] %v1657_v45 }
 0x19f   : > { %2251 = vmatprep.mubr.f32.mxu1 %v1464_v3  ;;  %v1265_v60 = vadd.f32 %v1217_v13, %v1165_v24  ;;  %1890 = vst [vmem:[%s4609_s25] sm:$0xff] %v1652_v4 }
 0x1a0   : > { %2216 = vmatmul.mubr.f32.gmra.mrb[22].mxu0 %v1441_v9 }
 0x1a1   : > { %v1365_v35 = vadd.f32 %v1317_v0, %v1265_v60 }
 0x1a3   : > { %v1465_v1 = vadd.f32 %v1417_v48, %v1365_v35 }
 0x1a4   : > { %v2220_v20 = vpop.f32.mrb[0].mxu1 }
 0x1a5   : > { %2252 = vmatmul.mubr.f32.gmra.mrb[22].mxu1 %v1465_v1  ;;  %v1777_v31 = vadd.f32 %v2220_v20, %v4605_v37  ;;  %v1771_v33 = vpop.f32.mrb[1].mxu1 }
 0x1a6   : > { %v1772_v54 = vadd.f32 %v4605_v37, %v1771_v33 }
 0x1a7   : > { %1915 = vst [vmem:[%s4609_s25 + $0xc8] sm:$0xff] %v1777_v31 }
 0x1a8   : > { %1914 = vst [vmem:[%s4609_s25 + $0xc0] sm:$0xff] %v1772_v54 }
 0x1b2   : > { %v2187_v6 = vpop.f32.mrb[2].mxu0 }
 0x1b3   : > { %v1667_v44 = vadd.f32 %v2187_v6, %v4605_v37  ;;  %v1661_v46 = vpop.f32.mrb[3].mxu0 }
 0x1b4   : > { %v1662_v15 = vadd.f32 %v4605_v37, %v1661_v46 }
 0x1b5   : > { %1893 = vst [vmem:[%s4609_s25 + $0x18] sm:$0xff] %v1667_v44  ;;  %v2223_v27 = vpop.f32.mrb[2].mxu1 }
 0x1b6   : > { %v1787_v5 = vadd.f32 %v2223_v27, %v4605_v37  ;;  %1892 = vst [vmem:[%s4609_s25 + $0x10] sm:$0xff] %v1662_v15  ;;  %v1781_v36 = vpop.f32.mrb[3].mxu1 }
 0x1b7   : > { %v1782_v58 = vadd.f32 %v4605_v37, %v1781_v36 }
 0x1b8   : > { %1917 = vst [vmem:[%s4609_s25 + $0xd8] sm:$0xff] %v1787_v5 }
 0x1b9   : > { %1916 = vst [vmem:[%s4609_s25 + $0xd0] sm:$0xff] %v1782_v58 }
 0x1ce   : > { %v2190_v41 = vpop.f32.mrb[4].mxu0 }
 0x1cf   : > { %v1677_v17 = vadd.f32 %v2190_v41, %v4605_v37  ;;  %v1671_v7 = vpop.f32.mrb[5].mxu0 }
 0x1d0   : > { %v1672_v55 = vadd.f32 %v4605_v37, %v1671_v7 }
 0x1d1   : > { %1895 = vst [vmem:[%s4609_s25 + $0x28] sm:$0xff] %v1677_v17 }
 0x1d2   : > { %1894 = vst [vmem:[%s4609_s25 + $0x20] sm:$0xff] %v1672_v55 }
 0x1d5   : > { %v2226_v56 = vpop.f32.mrb[4].mxu1 }
 0x1d6   : > { %v1797_v8 = vadd.f32 %v2226_v56, %v4605_v37  ;;  %v1791_v63 = vpop.f32.mrb[5].mxu1 }
 0x1d7   : > { %v1792_v50 = vadd.f32 %v4605_v37, %v1791_v63 }
 0x1d8   : > { %1919 = vst [vmem:[%s4609_s25 + $0xe8] sm:$0xff] %v1797_v8 }
 0x1d9   : > { %1918 = vst [vmem:[%s4609_s25 + $0xe0] sm:$0xff] %v1792_v50 }
 0x1e2   : > { %v2193_v32 = vpop.f32.mrb[6].mxu0 }
 0x1e3   : > { %v1687_v42 = vadd.f32 %v2193_v32, %v4605_v37  ;;  %v1681_v61 = vpop.f32.mrb[7].mxu0 }
 0x1e4   : > { %v1682_v49 = vadd.f32 %v4605_v37, %v1681_v61 }
 0x1e5   : > { %1897 = vst [vmem:[%s4609_s25 + $0x38] sm:$0xff] %v1687_v42 }
 0x1e6   : > { %1896 = vst [vmem:[%s4609_s25 + $0x30] sm:$0xff] %v1682_v49 }
 0x1e7   : > { %v2229_v52 = vpop.f32.mrb[6].mxu1 }
 0x1e8   : > { %v1807_v59 = vadd.f32 %v2229_v52, %v4605_v37  ;;  %v1801_v30 = vpop.f32.mrb[7].mxu1 }
 0x1e9   : > { %v1802_v10 = vadd.f32 %v4605_v37, %v1801_v30 }
 0x1ea   : > { %1921 = vst [vmem:[%s4609_s25 + $0xf8] sm:$0xff] %v1807_v59 }
 0x1eb   : > { %1920 = vst [vmem:[%s4609_s25 + $0xf0] sm:$0xff] %v1802_v10 }
 0x1f7   : > { %v2196_v62 = vpop.f32.mrb[8].mxu0 }
 0x1f8   : > { %v1697_v43 = vadd.f32 %v2196_v62, %v4605_v37  ;;  %v1691_v38 = vpop.f32.mrb[9].mxu0 }
 0x1f9   : > { %v1692_v21 = vadd.f32 %v4605_v37, %v1691_v38 }
 0x1fa   : > { %1899 = vst [vmem:[%s4609_s25 + $0x48] sm:$0xff] %v1697_v43 }
 0x1fb   : > { %1898 = vst [vmem:[%s4609_s25 + $0x40] sm:$0xff] %v1692_v21 }
 0x1fc   : > { %v2232_v51 = vpop.f32.mrb[8].mxu1 }
 0x1fd   : > { %v1817_v57 = vadd.f32 %v2232_v51, %v4605_v37  ;;  %v1811_v23 = vpop.f32.mrb[9].mxu1 }
 0x1fe   : > { %v1812_v22 = vadd.f32 %v4605_v37, %v1811_v23 }
 0x1ff   : > { %1923 = vst [vmem:[%s4609_s25 + $0x108] sm:$0xff] %v1817_v57 }
 0x200   : > { %1922 = vst [vmem:[%s4609_s25 + $0x100] sm:$0xff] %v1812_v22 }
 0x20c   : > { %v2199_v12 = vpop.f32.mrb[10].mxu0 }
 0x20d   : > { %v1707_v11 = vadd.f32 %v2199_v12, %v4605_v37  ;;  %v1701_v19 = vpop.f32.mrb[11].mxu0 }
 0x20e   : > { %v1702_v25 = vadd.f32 %v4605_v37, %v1701_v19 }
 0x20f   : > { %1901 = vst [vmem:[%s4609_s25 + $0x58] sm:$0xff] %v1707_v11 }
 0x210   : > { %1900 = vst [vmem:[%s4609_s25 + $0x50] sm:$0xff] %v1702_v25 }
 0x211   : > { %v2235_v26 = vpop.f32.mrb[10].mxu1 }
 0x212   : > { %v1827_v39 = vadd.f32 %v2235_v26, %v4605_v37  ;;  %v1821_v53 = vpop.f32.mrb[11].mxu1 }
 0x213   : > { %v1822_v29 = vadd.f32 %v4605_v37, %v1821_v53 }
 0x214   : > { %1925 = vst [vmem:[%s4609_s25 + $0x118] sm:$0xff] %v1827_v39 }
 0x215   : > { %1924 = vst [vmem:[%s4609_s25 + $0x110] sm:$0xff] %v1822_v29 }
 0x221   : > { %v2202_v16 = vpop.f32.mrb[12].mxu0 }
 0x222   : > { %v1717_v2 = vadd.f32 %v2202_v16, %v4605_v37  ;;  %v1711_v34 = vpop.f32.mrb[13].mxu0 }
 0x223   : > { %v1712_v13 = vadd.f32 %v4605_v37, %v1711_v34 }
 0x224   : > { %1903 = vst [vmem:[%s4609_s25 + $0x68] sm:$0xff] %v1717_v2 }
 0x225   : > { %1902 = vst [vmem:[%s4609_s25 + $0x60] sm:$0xff] %v1712_v13 }
 0x226   : > { %v2238_v28 = vpop.f32.mrb[12].mxu1 }
 0x227   : > { %v1837_v40 = vadd.f32 %v2238_v28, %v4605_v37  ;;  %v1831_v18 = vpop.f32.mrb[13].mxu1 }
 0x228   : > { %v1832_v3 = vadd.f32 %v4605_v37, %v1831_v18 }
 0x229   : > { %1927 = vst [vmem:[%s4609_s25 + $0x128] sm:$0xff] %v1837_v40 }
 0x22a   : > { %1926 = vst [vmem:[%s4609_s25 + $0x120] sm:$0xff] %v1832_v3 }
 0x236   : > { %v2205_v24 = vpop.f32.mrb[14].mxu0 }
 0x237   : > { %v1727_v0 = vadd.f32 %v2205_v24, %v4605_v37  ;;  %v1721_v9 = vpop.f32.mrb[15].mxu0 }
 0x238   : > { %v1722_v60 = vadd.f32 %v4605_v37, %v1721_v9 }
 0x239   : > { %1905 = vst [vmem:[%s4609_s25 + $0x78] sm:$0xff] %v1727_v0 }
 0x23a   : > { %1904 = vst [vmem:[%s4609_s25 + $0x70] sm:$0xff] %v1722_v60 }
 0x23b   : > { %v2241_v48 = vpop.f32.mrb[14].mxu1 }
 0x23c   : > { %v1847_v47 = vadd.f32 %v2241_v48, %v4605_v37  ;;  %v1841_v45 = vpop.f32.mrb[15].mxu1 }
 0x23d   : > { %v1842_v14 = vadd.f32 %v4605_v37, %v1841_v45 }
 0x23e   : > { %1929 = vst [vmem:[%s4609_s25 + $0x138] sm:$0xff] %v1847_v47 }
 0x23f   : > { %1928 = vst [vmem:[%s4609_s25 + $0x130] sm:$0xff] %v1842_v14 }
 0x24c   : > { %v2208_v35 = vpop.f32.mrb[16].mxu0 }
 0x24d   : > { %v1737_v4 = vadd.f32 %v2208_v35, %v4605_v37  ;;  %v1731_v1 = vpop.f32.mrb[17].mxu0 }
 0x24e   : > { %v1732_v20 = vadd.f32 %v4605_v37, %v1731_v1 }
 0x24f   : > { %1907 = vst [vmem:[%s4609_s25 + $0x88] sm:$0xff] %v1737_v4 }
 0x250   : > { %1906 = vst [vmem:[%s4609_s25 + $0x80] sm:$0xff] %v1732_v20 }
 0x251   : > { %v2244_v31 = vpop.f32.mrb[16].mxu1 }
 0x252   : > { %v1857_v33 = vadd.f32 %v2244_v31, %v4605_v37  ;;  %v1851_v54 = vpop.f32.mrb[17].mxu1 }
 0x253   : > { %v1852_v6 = vadd.f32 %v4605_v37, %v1851_v54 }
 0x254   : > { %1931 = vst [vmem:[%s4609_s25 + $0x148] sm:$0xff] %v1857_v33 }
 0x255   : > { %1930 = vst [vmem:[%s4609_s25 + $0x140] sm:$0xff] %v1852_v6 }
 0x258   : > { %v2211_v44 = vpop.f32.mrb[18].mxu0 }
 0x259   : > { %v1747_v46 = vadd.f32 %v2211_v44, %v4605_v37  ;;  %v1741_v15 = vpop.f32.mrb[19].mxu0 }
 0x25a   : > { %v1742_v27 = vadd.f32 %v4605_v37, %v1741_v15 }
 0x25b   : > { %1909 = vst [vmem:[%s4609_s25 + $0x98] sm:$0xff] %v1747_v46 }
 0x25c   : > { %1908 = vst [vmem:[%s4609_s25 + $0x90] sm:$0xff] %v1742_v27 }
 0x25e   : > { %v2247_v5 = vpop.f32.mrb[18].mxu1 }
 0x25f   : > { %v1867_v36 = vadd.f32 %v2247_v5, %v4605_v37  ;;  %v1861_v58 = vpop.f32.mrb[19].mxu1 }
 0x260   : > { %v1862_v41 = vadd.f32 %v4605_v37, %v1861_v58 }
 0x261   : > { %1933 = vst [vmem:[%s4609_s25 + $0x158] sm:$0xff] %v1867_v36 }
 0x262   : > { %1932 = vst [vmem:[%s4609_s25 + $0x150] sm:$0xff] %v1862_v41 }
 0x267   : > { %v2214_v17 = vpop.f32.mrb[20].mxu0 }
 0x268   : > { %v1757_v7 = vadd.f32 %v2214_v17, %v4605_v37  ;;  %v1751_v55 = vpop.f32.mrb[21].mxu0 }
 0x269   : > { %v1752_v56 = vadd.f32 %v4605_v37, %v1751_v55 }
 0x26a   : > { %1911 = vst [vmem:[%s4609_s25 + $0xa8] sm:$0xff] %v1757_v7 }
 0x26b   : > { %v2250_v8 = vpop.f32.mrb[20].mxu1  ;;  %1910 = vst [vmem:[%s4609_s25 + $0xa0] sm:$0xff] %v1752_v56 }
 0x26c   : > { %v1877_v63 = vadd.f32 %v2250_v8, %v4605_v37  ;;  %v1871_v50 = vpop.f32.mrb[21].mxu1 }
 0x26d   : > { %v1872_v32 = vadd.f32 %v4605_v37, %v1871_v50 }
 0x26e   : > { %1935 = vst [vmem:[%s4609_s25 + $0x168] sm:$0xff] %v1877_v63 }
 0x26f   : > { %1934 = vst [vmem:[%s4609_s25 + $0x160] sm:$0xff] %v1872_v32 }
 0x273   : > { %v2217_v42 = vpop.f32.mrb[22].mxu0 }
 0x274   : > { %v1767_v61 = vadd.f32 %v2217_v42, %v4605_v37  ;;  %v1761_v49 = vpop.f32.mrb[23].mxu0 }
 0x275   : > { %v1762_v52 = vadd.f32 %v4605_v37, %v1761_v49 }
 0x276   : > { %1913 = vst [vmem:[%s4609_s25 + $0xb8] sm:$0xff] %v1767_v61 }
 0x277   : > { %1912 = vst [vmem:[%s4609_s25 + $0xb0] sm:$0xff] %v1762_v52 }
 0x278   : > { %v2253_v59 = vpop.f32.mrb[22].mxu1 }
 0x279   : > { %v1887_v30 = vadd.f32 %v2253_v59, %v4605_v37  ;;  %v1881_v10 = vpop.f32.mrb[23].mxu1 }
 0x27a   : > { %v1882_v62 = vadd.f32 %v4605_v37, %v1881_v10 }
 0x27b   : > { %1937 = vst [vmem:[%s4609_s25 + $0x178] sm:$0xff] %v1887_v30 }
 0x27c   : > { %1936 = vst [vmem:[%s4609_s25 + $0x170] sm:$0xff] %v1882_v62 }
 0x27d   : > { %2539 = shalt.err (!%p2536_p0)
}
 0x27e   : > { %s2540_s5 = scalar_lea.hbm %s4707_s26, 6144  ;;  %s2544_s22 = scalar_lea.hbm %s4765_s4, 12288 }
 0x27f   : > { %p2541_p4 = scmp.ne.s32.totalorder %s4707_s26, %s2540_s5  ;;  %p2545_p12 = scmp.lt.u32.totalorder %s4707_s26, %s4765_s4 }
 0x280   : > { %p2546_p1 = scmp.lt.u32.totalorder %s2544_s22, %s2540_s5  ;;  %p2548_p13 = scmp.lt.u32.totalorder %s2540_s5, %s4707_s26 }
 0x281   : > { %p2542_p2 = pnand %p2541_p4, %p2809_p10 }
 0x282   : > { %p2547_p11 = por %p2546_p1, %p2545_p12 }
 0x283   : > { %p2543_p8 = pneg %p2542_p2 }
 0x284   : > { %p2549_p6 = por %p2548_p13, %p2547_p11 }
 0x286   : > { %p2550_p3 = pnand %p2549_p6, %p2543_p8 }
 0x288   : > { %2553 = shalt.err (!%p2550_p3)
}
 0x289   : > { %s2625_s25 = smov 128   ;;  %s2626_s27 = smov 8  }
 0x28a   : > { %2321 = dma.vmem_to_hbm [thread:$0]  (%p2809_p10), %s4709_s7, 6144, %s4707_s26, %s1939_s18, %s2625_s25, %s2625_s25, %s2626_s27  }
 0x28b PF: > { %s4939_s21 = sld [smem:[#allocation16_spill]]  ;;  %s1968_s29 = sand.u32 1, %s2596_s15  }
 0x28c   : > { %p4941_p7 = scmp.ge.s32.totalorder %s2616_s20, 2  ;;  %s1969_s9 = scalar_lea.sflag [#allocation5], %s1968_s29 }
 0x291   : > { %p4940_p5 = scmp.ne.s32.totalorder %s4939_s21, 0 }
 0x293   : > { %p2338_p9 = pnand %p4941_p7, %p4940_p5 }
 0x295   : > { %2591 = dma.done.wait (!%p2338_p9), %s1969_s9, 6144  }
 0x296   : > { %2593 = vsyncadd (!%p2338_p9), %s1969_s9, 4294961152  ;;  %s22_s20 = sadd.s32 1, %s2616_s20   ;;  %s4942_s15 = smov %s2600_s16 }
 0x297   : > { %p19_p0 = scmp.ge.s32.totalorder %s22_s20, 4   ;;  %s4943_s16 = smov %s2604_s17 }
 0x298   : > { %s4944_s17 = smov %s2825_s24  ;;  %s4945_s18 = smov %s2612_s19 }
 0x299   : > { %s4946_s19 = smov %s4948_s10  ;;  %21 = sbr.rel (!%p19_p0) target bundleno = 8 (0x8), region = 99 }
 0x2a0   :  { %1974 = vsyncpa [#allocation4], 1 }
 0x2a1   :  { %1976 = vsyncpa [#allocation4 + $0x1], 1 }
 0x2a2   :  { %1977 = vsyncpa [#allocation7], 1 }
 0x2a3   :  { %1978 = vsyncpa [#allocation10], 1 }
 0x2a4   :  { %1979 = vsyncpa [#allocation5], 1 }
 0x2a5   :  { %1981 = vsyncpa [#allocation5 + $0x1], 1 }

</bundles_post_ra>
